<compile_context>
chip_gen: v6e
topology: v6e:2x2x1
jax: 0.10.0
libtpu: 0.0.40
codegen_flags: <defaults>
</compile_context>

<pallas_src>
import jax
import jax.numpy as jnp
from jax import lax
from jax.experimental import pallas as pl
from jax.experimental.pallas import tpu as pltpu

IN_FEATURES = 11
OUT_FEATURES = 1
_LANE = 128

_DEFAULT_MAX_TILE = 32768          # rows per grid step (multiple of 128)
_VMEM_BUDGET = 44 << 20            # double-buffered working set cap (all gens)
_MEGACORE_SPLIT = 8192             # above this, force >=2 tiles (v7x: 2 TCs)
_DEFAULT_MIN_PALLAS_BATCH = 16384  # below this, XLA matvec beats the launch cost


def _make_linear_kernel(precision):
    def kernel(w_ref, b_ref, f_ref, o_ref):
        # w_ref: (1, 11) VMEM (input dtype)      b_ref: (1,) f32 SMEM
        # f_ref: (tb, 11) VMEM (natural layout)  o_ref: (1, tb) f32 VMEM
        #
        # Contract the 11-dim on-chip; output stays a lane-dense (1, tb) row,
        # accumulated in f32.
        acc = lax.dot_general(
            w_ref[...], f_ref[...],
            dimension_numbers=(((1,), (1,)), ((), ())),
            preferred_element_type=jnp.float32,
            precision=precision)
        o_ref[...] = acc + b_ref[0]
    return kernel


def test_model_forward(x, features, weight, bias, *,
                       max_tile=_DEFAULT_MAX_TILE,
                       min_pallas_batch=_DEFAULT_MIN_PALLAS_BATCH):
    """Mirror of TestModel.forward(x, features): only `features` is used."""
    del x  # not used by the PyTorch forward
    if features.shape[-1] != IN_FEATURES:
        raise ValueError(f"expected {IN_FEATURES} features, got {features.shape}")
    B = features.shape[0]

    # Only f32 / bf16 are streamed natively; anything else is promoted to f32.
    if features.dtype not in (jnp.float32, jnp.bfloat16):
        features = features.astype(jnp.float32)

    w_row = weight.reshape(OUT_FEATURES, IN_FEATURES)
    b_vec = bias.reshape(OUT_FEATURES).astype(jnp.float32)

    # Small-batch fast path: let XLA fuse the matvec with the feature producer.
    if B < min_pallas_batch:
        return (jnp.dot(features.astype(jnp.float32),
                        w_row.astype(jnp.float32).T,
                        precision=lax.Precision.HIGHEST) + b_vec)

    # --- Pallas path ---------------------------------------------------------
    w_row = w_row.astype(features.dtype)             # stream weights in input dtype
    itemsize = jnp.dtype(features.dtype).itemsize

    # Batch-tile selection (always a multiple of 128 lanes).
    max_tile = max(_LANE, (int(max_tile) // _LANE) * _LANE)
    # Double-buffered per-row VMEM cost: input row lane-padded 11->128 plus the
    # (1, tb) f32 output block (8 sublane-padded) => 2*(128*itemsize + 32) B/row.
    per_row = 2 * (_LANE * itemsize + 8 * 4)
    vmem_cap = max(_LANE, (_VMEM_BUDGET // per_row) // _LANE * _LANE)
    b_ceil = _LANE * pl.cdiv(B, _LANE)
    tb = min(max_tile, vmem_cap, b_ceil)
    # v7x megacore: keep >=2 grid steps for large batches so both TCs stream.
    if B > _MEGACORE_SPLIT and pl.cdiv(B, tb) == 1:
        tb = _LANE * pl.cdiv(pl.cdiv(B, 2), _LANE)
    num_tiles = pl.cdiv(B, tb)
    b_pad = num_tiles * tb

    # Explicit scoped-VMEM limit (above the 16/32 MiB defaults), with headroom,
    # but safely under v7x's 64 MiB physical VMEM.
    vmem_limit = int(min(56 << 20,
                         2 * (tb * _LANE * itemsize + 8 * tb * 4) + (8 << 20)))

    precision = (lax.Precision.HIGHEST if features.dtype == jnp.float32
                 else lax.Precision.DEFAULT)
    kernel = _make_linear_kernel(precision)

    cost = pl.CostEstimate(
        flops=2 * B * IN_FEATURES,
        transcendentals=0,
        bytes_accessed=int(B * IN_FEATURES * itemsize + B * 4
                           + IN_FEATURES * itemsize + 4))

    out_row = pl.pallas_call(
        kernel,
        out_shape=jax.ShapeDtypeStruct((1, b_pad), jnp.float32),
        grid=(num_tiles,),
        in_specs=[
            pl.BlockSpec((OUT_FEATURES, IN_FEATURES), lambda i: (0, 0)),  # weight row
            pl.BlockSpec(memory_space=pltpu.MemorySpace.SMEM),            # bias scalar
            pl.BlockSpec((tb, IN_FEATURES), lambda i: (i, 0)),            # feature tile
        ],
        out_specs=pl.BlockSpec((1, tb), lambda i: (0, i)),
        compiler_params=pltpu.CompilerParams(
            dimension_semantics=("parallel",),
            vmem_limit_bytes=vmem_limit),
        cost_estimate=cost,
    )(w_row, b_vec, features)

    # Padded tail columns (partial final tile) are sliced off here.
    return out_row[0, :B].reshape(B, OUT_FEATURES)


def init_params(key):
    """Deterministic init matching nn.Linear(11, 1) (PyTorch-style uniform)."""
    k_w, k_b = jax.random.split(key)
    bound = 1.0 / jnp.sqrt(jnp.float32(IN_FEATURES))
    weight = jax.random.uniform(
        k_w, (OUT_FEATURES, IN_FEATURES), jnp.float32, -bound, bound)
    bias = jax.random.uniform(k_b, (OUT_FEATURES,), jnp.float32, -bound, bound)
    return weight, bias


if __name__ == "__main__":
    key = jax.random.PRNGKey(0)
    k_params, k_x, k_f = jax.random.split(key, 3)

    weight, bias = init_params(k_params)

    B = 600  # deliberately not a multiple of 128 -> exercises the partial tail tile
    x = jax.random.randint(k_x, (B, 16), 0, 100, dtype=jnp.int32)  # ignored by forward
    features = jax.random.normal(k_f, (B, IN_FEATURES), dtype=jnp.float32)

    ref = (jnp.dot(features, weight.T, precision=lax.Precision.HIGHEST)
           + bias.reshape(OUT_FEATURES))

    # 1) Force the Pallas path: single 640-row tile with a partial final block.
    out = jax.block_until_ready(
        test_model_forward(x, features, weight, bias, min_pallas_batch=0))
    assert out.shape == (B, OUT_FEATURES)
    assert jnp.allclose(out, ref, atol=1e-4, rtol=1e-4), "mismatch (single tile)"

    # 2) Multi-tile path: 3 parallel batch tiles of 256 rows.
    out_tiled = jax.block_until_ready(
        test_model_forward(x, features, weight, bias,
                           max_tile=256, min_pallas_batch=0))
    assert jnp.allclose(out_tiled, ref, atol=1e-4, rtol=1e-4), "mismatch (tiled)"

    # 3) bf16 streaming path (halved HBM traffic, f32 accumulation in-kernel).
    feats_bf16 = features.astype(jnp.bfloat16)
    ref_bf16 = (jnp.dot(feats_bf16.astype(jnp.float32),
                        weight.astype(jnp.bfloat16).astype(jnp.float32).T,
                        precision=lax.Precision.HIGHEST)
                + bias.reshape(OUT_FEATURES))
    out_bf16 = jax.block_until_ready(
        test_model_forward(x, feats_bf16, weight, bias, min_pallas_batch=0))
    assert jnp.allclose(out_bf16, ref_bf16, atol=1e-3, rtol=1e-3), "mismatch (bf16)"

    # 4) Default dispatch: small B takes the XLA fast path.
    out_fast = jax.block_until_ready(test_model_forward(x, features, weight, bias))
    assert jnp.allclose(out_fast, ref, atol=1e-4, rtol=1e-4), "mismatch (fast path)"

    print("KERNEL_OK")
</pallas_src>

<mosaic_0001>
module attributes {stable_mosaic.version = 11 : i64} {
  func.func @kernel(%arg0: i32, %arg1: memref<1x11xf32, #tpu.memory_space<vmem>>, %arg2: memref<1xf32, #tpu.memory_space<smem>>, %arg3: memref<640x11xf32, #tpu.memory_space<vmem>>, %arg4: memref<1x640xf32, #tpu.memory_space<vmem>>) attributes {dimension_semantics = [#tpu.dimension_semantics<parallel>], iteration_bounds = array<i64: 1>, scalar_prefetch = 0 : i64, scratch_operands = 0 : i64, tpu.core_type = #tpu.core_type<tc>, window_params = [{pipeline_mode = #tpu.pipeline_mode<synchronous>, transform_indices = @transform_0, window_bounds = array<i64: 1, 11>}, {transform_indices = @transform_1, window_bounds = array<i64: 1>}, {transform_indices = @transform_2, window_bounds = array<i64: 640, 11>}, {transform_indices = @transform_3, window_bounds = array<i64: 1, 640>}]} {
    %c0 = arith.constant 0 : index
    %c0_0 = arith.constant 0 : index
    %0 = vector.load %arg1[%c0, %c0_0] : memref<1x11xf32, #tpu.memory_space<vmem>>, vector<1x11xf32>
    %c0_1 = arith.constant 0 : index
    %c0_2 = arith.constant 0 : index
    %1 = vector.load %arg3[%c0_1, %c0_2] : memref<640x11xf32, #tpu.memory_space<vmem>>, vector<640x11xf32>
    %cst = arith.constant dense<0.000000e+00> : vector<1x640xf32>
    %2 = tpu.matmul %0, %1, %cst {dimension_numbers = #tpu.dot_dimension_numbers<[1], [1], [0], [0], [0, 0, 1, 0], [], []>, precision = #tpu.contract_precision<fp32>} : vector<1x11xf32>, vector<640x11xf32>, vector<1x640xf32> -> vector<1x640xf32>
    %c0_3 = arith.constant 0 : index
    %3 = memref.load %arg2[%c0_3] : memref<1xf32, #tpu.memory_space<smem>>
    %4 = vector.broadcast %3 : f32 to vector<1x640xf32>
    %5 = arith.addf %2, %4 : vector<1x640xf32>
    %c0_4 = arith.constant 0 : index
    %c0_5 = arith.constant 0 : index
    %6 = vector.load %arg4[%c0_4, %c0_5] : memref<1x640xf32, #tpu.memory_space<vmem>>, vector<1x640xf32>
    tpu.vector_store %arg4[%c0_4, %c0_5], %5 {strides = array<i32>} : memref<1x640xf32, #tpu.memory_space<vmem>>, vector<1x640xf32>,
    return
  }
  func.func @transform_0(%arg0: i32) -> (i32, i32) {
    %c0_i32 = arith.constant 0 : i32
    %c0_i32_0 = arith.constant 0 : i32
    %c0_i32_1 = arith.constant 0 : i32
    return %c0_i32, %c0_i32_0 : i32, i32
  }
  func.func @transform_1(%arg0: i32) -> i32 {
    %c0_i32 = arith.constant 0 : i32
    %c0_i32_0 = arith.constant 0 : i32
    return %c0_i32 : i32
  }
  func.func @transform_2(%arg0: i32) -> (i32, i32) {
    %c0_i32 = arith.constant 0 : i32
    %c0_i32_0 = arith.constant 0 : i32
    return %arg0, %c0_i32 : i32, i32
  }
  func.func @transform_3(%arg0: i32) -> (i32, i32) {
    %c0_i32 = arith.constant 0 : i32
    %c0_i32_0 = arith.constant 0 : i32
    return %c0_i32, %arg0 : i32, i32
  }
}

</mosaic_0001>

<bundles_post_ra>
// kernel: tpu_custom_call.1
= control target key start
LH: loop header
LB: loop body
LE: loop exit
PB: predicated region body
PF: predicated region fallthrough
CT: control target
= control target key end

     0   :  { %vm99_vm0 = vcmask 89088   ;;  %s5230_s0 = inlined_call_operand.vmem [shape: f32[1,11], index: 0, kind: input, shape index: {}]   ;;  %s5231_s1 = inlined_call_operand.<no memory space> [shape: f32[1], index: 1, kind: input, shape index: {}]   ;;  %s5232_s2 = inlined_call_operand.vmem [shape: f32[600,11], index: 2, kind: input, shape index: {}]   ;;  %s5233_s3 = inlined_call_operand.hbm [shape: f32[1,640], index: 3, kind: output, shape index: {}]  }
   0x1   :  { %v48_v0 = vld [vmem:[%s5232_s2 + $0xf8] sm:$0xff]  ;;  %v47_v2 = vld [vmem:[%s5232_s2 + $0xf0] sm:$0xff]  ;;  %v46_v7 = vld [vmem:[%s5232_s2 + $0xe8] sm:$0xff] }
   0x2   :  { %v32_v1 = vld [vmem:[%s5232_s2 + $0x78] sm:$0xff]  ;;  %v197_v3 = vsel %vm99_vm0, %v48_v0, 0  ;;  %v194_v5 = vsel %vm99_vm0, %v47_v2, 0  ;;  %v31_v6 = vld [vmem:[%s5232_s2 + $0x70] sm:$0xff]  ;;  %v30_v8 = vld [vmem:[%s5232_s2 + $0x68] sm:$0xff]  ;;  %v191_v16 = vsel %vm99_vm0, %v46_v7, 0 }
   0x3   :  { %v149_v4 = vsel %vm99_vm0, %v32_v1, 0  ;;  %v3549_v9 = vand.u32 4294901760, %v197_v3  ;;  %v3553_v11 = vand.u32 4294901760, %v194_v5  ;;  %v146_v12 = vsel %vm99_vm0, %v31_v6, 0  ;;  %v45_v13 = vld [vmem:[%s5232_s2 + $0xe0] sm:$0xff]  ;;  %v44_v19 = vld [vmem:[%s5232_s2 + $0xd8] sm:$0xff] }
   0x4   :  { %v3551_v10 = vand.u32 4294901760, %v149_v4  ;;  %v29_v14 = vld [vmem:[%s5232_s2 + $0x60] sm:$0xff]  ;;  %v3562_v15 = vand.u32 4294901760, %v146_v12  ;;  %v143_v17 = vsel %vm99_vm0, %v30_v8, 0  ;;  %v188_v18 = vsel %vm99_vm0, %v45_v13, 0  ;;  %v28_v27 = vld [vmem:[%s5232_s2 + $0x58] sm:$0xff] }
   0x5   :  { %2758 = vmatprep.subr.mxu0 %v3549_v9  ;;  %v3571_v20 = vand.u32 4294901760, %v191_v16  ;;  %v3574_v21 = vsub.f32 %v197_v3, %v3549_v9  ;;  %v3576_v22 = vand.u32 4294901760, %v143_v17  ;;  %v3583_v24 = vsub.f32 %v194_v5, %v3553_v11  ;;  %v43_v36 = vld [vmem:[%s5232_s2 + $0xd0] sm:$0xff]  ;;  %v42_v50 = vld [vmem:[%s5232_s2 + $0xc8] sm:$0xff]  ;;  %v41_v60 = vld [vmem:[%s5232_s2 + $0xc0] sm:$0xff] }
   0x6   :  { %v3579_v23 = vsub.f32 %v149_v4, %v3551_v10  ;;  %2759 = vmatpush3.xpose.msra.mxu0 %v3551_v10  ;;  %v140_v25 = vsel %vm99_vm0, %v29_v14, 0  ;;  %v3587_v26 = vsub.f32 %v146_v12, %v3562_v15  ;;  %v3595_v30 = vand.u32 4294901760, %v188_v18  ;;  %v27_v45 = vld [vmem:[%s5232_s2 + $0x50] sm:$0xff]  ;;  %v26_v59 = vld [vmem:[%s5232_s2 + $0x48] sm:$0xff] }
   0x7   :  { %2760 = vmatprep.subr.mxu0 %v3553_v11  ;;  %v5250_v28 = vand.u32 4294901760, %v3574_v21  ;;  %v185_v31 = vsel %vm99_vm0, %v44_v19, 0  ;;  %v5247_v32 = vand.u32 4294901760, %v3583_v24  ;;  %v3599_v33 = vand.u32 4294901760, %v140_v25 }
   0x8   :  { %v5249_v29 = vand.u32 4294901760, %v3579_v23  ;;  %v5245_v34 = vand.u32 4294901760, %v3587_v26  ;;  %v3603_v35 = vsub.f32 %v191_v16, %v3571_v20  ;;  %v137_v39 = vsel %vm99_vm0, %v28_v27, 0 }
   0x9   :  { %v567_v37 = vsub.f32 %v3574_v21, %v5250_v28  ;;  %v3616_v40 = vsub.f32 %v143_v17, %v3576_v22  ;;  %v574_v41 = vsub.f32 %v3583_v24, %v5247_v32  ;;  %v3625_v43 = vand.u32 4294901760, %v185_v31 }
   0xa   :  { %v455_v38 = vsub.f32 %v3579_v23, %v5249_v29  ;;  %2761 = vmatpush3.xpose.msra.mxu0 %v3562_v15  ;;  %v462_v42 = vsub.f32 %v3587_v26, %v5245_v34  ;;  %v5244_v44 = vand.u32 4294901760, %v3603_v35  ;;  %v182_v49 = vsel %vm99_vm0, %v43_v36, 0 }
   0xb   :  { %2762 = vmatprep.subr.mxu0 %v3571_v20  ;;  %v568_v46 = vand.u32 4294901760, %v567_v37  ;;  %v5243_v48 = vand.u32 4294901760, %v3616_v40  ;;  %v575_v51 = vand.u32 4294901760, %v574_v41  ;;  %v3640_v54 = vand.u32 4294901760, %v137_v39 }
   0xc   :  { %v456_v47 = vand.u32 4294901760, %v455_v38  ;;  %v463_v52 = vand.u32 4294901760, %v462_v42  ;;  %v581_v53 = vsub.f32 %v3603_v35, %v5244_v44  ;;  %v3646_v56 = vsub.f32 %v188_v18, %v3595_v30 }
   0xd   :  { %2792 = vmatprep.subr.mxu1 %v568_v46  ;;  %v469_v55 = vsub.f32 %v3616_v40, %v5243_v48  ;;  %v134_v57 = vsel %vm99_vm0, %v27_v45, 0  ;;  %v3650_v58 = vsub.f32 %v140_v25, %v3599_v33 }
   0xe   :  { %9 = vsyncpa [#allocation4], 0  ;;  %2763 = vmatpush3.xpose.msra.mxu0 %v3576_v22  ;;  %2793 = vmatpush3.xpose.msra.mxu1 %v456_v47  ;;  %v582_v61 = vand.u32 4294901760, %v581_v53  ;;  %v3659_v62 = vand.u32 4294901760, %v182_v49  ;;  %v179_v63 = vsel %vm99_vm0, %v42_v50, 0  ;;  %v3663_v0 = vsub.f32 %v185_v31, %v3625_v43  ;;  %v25_v5 = vld [vmem:[%s5232_s2 + $0x40] sm:$0xff] }
   0xf   :  { %2764 = vmatprep.subr.mxu0 %v3595_v30  ;;  %2794 = vmatprep.subr.mxu1 %v575_v51  ;;  %v470_v1 = vand.u32 4294901760, %v469_v55  ;;  %v5241_v2 = vand.u32 4294901760, %v3646_v56  ;;  %v3667_v3 = vand.u32 4294901760, %v134_v57  ;;  %v5240_v4 = vand.u32 4294901760, %v3650_v58  ;;  %v40_v18 = vld [vmem:[%s5232_s2 + $0xb8] sm:$0xff]  ;;  %v39_v46 = vld [vmem:[%s5232_s2 + $0xb0] sm:$0xff] }
  0x10   :  { %v5238_v6 = vand.u32 4294901760, %v3663_v0  ;;  %v131_v7 = vsel %vm99_vm0, %v26_v59, 0  ;;  %v3676_v8 = vsub.f32 %v137_v39, %v3640_v54  ;;  %v176_v12 = vsel %vm99_vm0, %v41_v60, 0  ;;  %v24_v39 = vld [vmem:[%s5232_s2 + $0x38] sm:$0xff]  ;;  %v23_v59 = vld [vmem:[%s5232_s2 + $0x30] sm:$0xff] }
  0x11   :  { %v588_v13 = vsub.f32 %v3646_v56, %v5241_v2  ;;  %v476_v14 = vsub.f32 %v3650_v58, %v5240_v4  ;;  %v3685_v16 = vand.u32 4294901760, %v179_v63  ;;  %v3687_v17 = vand.u32 4294901760, %v131_v7 }
  0x12   :  { %2765 = vmatpush3.xpose.msra.mxu0 %v3599_v33  ;;  %2795 = vmatpush3.xpose.msra.mxu1 %v463_v52  ;;  %v595_v19 = vsub.f32 %v3663_v0, %v5238_v6  ;;  %v5237_v25 = vand.u32 4294901760, %v3676_v8  ;;  %v3698_v27 = vsub.f32 %v182_v49, %v3659_v62  ;;  %v128_v31 = vsel %vm99_vm0, %v25_v5, 0  ;;  %v38_v5 = vld [vmem:[%s5232_s2 + $0xa8] sm:$0xff] }
  0x13   :  { %2766 = vmatprep.subr.mxu0 %v3625_v43  ;;  %2796 = vmatprep.subr.mxu1 %v582_v61  ;;  %v589_v36 = vand.u32 4294901760, %v588_v13  ;;  %v3702_v37 = vand.u32 4294901760, %v176_v12  ;;  %v3705_v38 = vsub.f32 %v134_v57, %v3667_v3  ;;  %v477_v41 = vand.u32 4294901760, %v476_v14 }
  0x14   :  { %v5235_v42 = vand.u32 4294901760, %v3698_v27  ;;  %v173_v45 = vsel %vm99_vm0, %v40_v18, 0  ;;  %v483_v47 = vsub.f32 %v3676_v8, %v5237_v25  ;;  %v3718_v49 = vand.u32 4294901760, %v128_v31 }
  0x15   :  { %v5234_v50 = vand.u32 4294901760, %v3705_v38  ;;  %v3722_v51 = vsub.f32 %v179_v63, %v3685_v16  ;;  %v596_v52 = vand.u32 4294901760, %v595_v19  ;;  %v3725_v53 = vand.u32 4294901760, %v173_v45 }
  0x16   :  { %5363 = vst [vmem:[#allocation6_spill] sm:$0xff] %v3718_v49  ;;  %2767 = vmatpush3.xpose.msra.mxu0 %v3640_v54  ;;  %2797 = vmatpush3.xpose.msra.mxu1 %v470_v1  ;;  %v125_v55 = vsel %vm99_vm0, %v24_v39, 0  ;;  %v3729_v57 = vsub.f32 %v131_v7, %v3687_v17  ;;  %v602_v60 = vsub.f32 %v3698_v27, %v5235_v42  ;;  %v170_v63 = vsel %vm99_vm0, %v39_v46, 0  ;;  %v22_v46 = vld [vmem:[%s5232_s2 + $0x28] sm:$0xff] }
  0x17   :  { %5364 = vst [vmem:[#allocation7_spill] sm:$0xff] %v3725_v53  ;;  %2768 = vmatprep.subr.mxu0 %v3659_v62  ;;  %2798 = vmatprep.subr.mxu1 %v589_v36  ;;  %v5236_v61 = vand.u32 4294901760, %v3722_v51  ;;  %v3741_v1 = vsub.f32 %v176_v12, %v3702_v37  ;;  %v484_v7 = vand.u32 4294901760, %v483_v47  ;;  %v490_v13 = vsub.f32 %v3705_v38, %v5234_v50 }
  0x18   :  { %v5239_v14 = vand.u32 4294901760, %v3729_v57  ;;  %v122_v18 = vsel %vm99_vm0, %v23_v59, 0  ;;  %v3752_v19 = vand.u32 4294901760, %v125_v55  ;;  %v3754_v12 = vand.u32 4294901760, %v170_v63 }
  0x19   :  { %v3757_v36 = vsub.f32 %v128_v31, %v3718_v49  ;;  %v167_v39 = vsel %vm99_vm0, %v38_v5, 0  ;;  %v603_v47 = vand.u32 4294901760, %v602_v60  ;;  %v5242_v59 = vand.u32 4294901760, %v3741_v1  ;;  %v37_v31 = vld [vmem:[%s5232_s2 + $0xa0] sm:$0xff] }
  0x1a   :  { %2769 = vmatpush3.xpose.msra.mxu0 %v3667_v3  ;;  %2799 = vmatpush3.xpose.msra.mxu1 %v477_v41  ;;  %5365 = vst [vmem:[#allocation8_spill] sm:$0xff] %v3752_v19  ;;  %5366 = vst [vmem:[#allocation9_spill] sm:$0xff] %v3754_v12  ;;  %v609_v41 = vsub.f32 %v3722_v51, %v5236_v61  ;;  %v3769_v50 = vsub.f32 %v173_v45, %v3725_v53  ;;  %v3774_v5 = vand.u32 4294901760, %v122_v18  ;;  %vm3505_vm1 = vmmov 0  }
  0x1b   :  { %2770 = vmatprep.subr.mxu0 %v3685_v16  ;;  %2800 = vmatprep.subr.mxu1 %v596_v52  ;;  %v491_v42 = vand.u32 4294901760, %v490_v13  ;;  %v497_v52 = vsub.f32 %v3729_v57, %v5239_v14  ;;  %v3779_v60 = vand.u32 4294901760, %v167_v39  ;;  %v119_v61 = vsel %vm99_vm0, %v22_v46, 0 }
  0x1c   :  { %5367 = vst [vmem:[#allocation10_spill] sm:$0xff] %v3774_v5  ;;  %v5246_v45 = vand.u32 4294901760, %v3757_v36  ;;  %v3785_v25 = vsub.f32 %v125_v55, %v3752_v19  ;;  %v164_v6 = vsel %vm99_vm0, %v37_v31, 0  ;;  %v3789_v13 = vsub.f32 %v170_v63, %v3754_v12  ;;  %v21_v55 = vld [vmem:[%s5232_s2 + $0x20] sm:$0xff] }
  0x1d   :  { %5368 = vst [vmem:[#allocation11_spill] sm:$0xff] %v3779_v60  ;;  %v610_v14 = vand.u32 4294901760, %v609_v41  ;;  %v616_v46 = vsub.f32 %v3741_v1, %v5242_v59  ;;  %v3799_v4 = vand.u32 4294901760, %v119_v61  ;;  %v3802_v31 = vsub.f32 %v122_v18, %v3774_v5 }
  0x1e   :  { %2771 = vmatpush3.xpose.msra.mxu0 %v3687_v17  ;;  %2801 = vmatpush3.xpose.msra.mxu1 %v484_v7  ;;  %v5248_v7 = vand.u32 4294901760, %v3769_v50  ;;  %v498_v63 = vand.u32 4294901760, %v497_v52  ;;  %v3804_v2 = vand.u32 4294901760, %v164_v6  ;;  %v3810_v41 = vsub.f32 %v167_v39, %v3779_v60 }
  0x1f   :  { %2772 = vmatprep.subr.mxu0 %v3702_v37  ;;  %2802 = vmatprep.subr.mxu1 %v603_v47  ;;  %5369 = vst [vmem:[#allocation12_spill] sm:$0xff] %v3799_v4  ;;  %5370 = vst [vmem:[#allocation13_spill] sm:$0xff] %v3802_v31  ;;  %v36_v47 = vld [vmem:[%s5232_s2 + $0x98] sm:$0xff]  ;;  %v504_v59 = vsub.f32 %v3757_v36, %v5246_v45  ;;  %v5251_v18 = vand.u32 4294901760, %v3785_v25  ;;  %v5252_v52 = vand.u32 4294901760, %v3789_v13  ;;  %v116_v48 = vsel %vm99_vm0, %v21_v55, 0 }
  0x20   :  { %5371 = vst [vmem:[#allocation14_spill] sm:$0xff] %v3804_v2  ;;  %5372 = vst [vmem:[#allocation15_spill] sm:$0xff] %v3810_v41  ;;  %v617_v44 = vand.u32 4294901760, %v616_v46  ;;  %v623_v39 = vsub.f32 %v3769_v50, %v5248_v7  ;;  %v161_v34 = vsel %vm99_vm0, %v36_v47, 0  ;;  %v20_v45 = vld [vmem:[%s5232_s2 + $0x18] sm:$0xff]  ;;  %v3829_v32 = vsub.f32 %v119_v61, %v3799_v4  ;;  %v35_v46 = vld [vmem:[%s5232_s2 + $0x90] sm:$0xff] }
  0x21   :  { %v3831_v55 = vand.u32 4294901760, %v116_v48  ;;  %v3838_v7 = vsub.f32 %v164_v6, %v3804_v2  ;;  %v505_v47 = vand.u32 4294901760, %v504_v59  ;;  %v511_v61 = vsub.f32 %v3785_v25, %v5251_v18 }
  0x22   :  { %2773 = vmatpush3.xpose.msra.mxu0 %v3718_v49  ;;  %2803 = vmatpush3.xpose.msra.mxu1 %v491_v42  ;;  %v5255_v42 = vand.u32 4294901760, %v3802_v31  ;;  %5373 = vst [vmem:[#allocation16_spill] sm:$0xff] %v3829_v32  ;;  %v630_v29 = vsub.f32 %v3789_v13, %v5252_v52  ;;  %v624_v28 = vand.u32 4294901760, %v623_v39  ;;  %v113_v6 = vsel %vm99_vm0, %v20_v45, 0  ;;  %v19_v52 = vld [vmem:[%s5232_s2 + $0x10] sm:$0xff] }
  0x23   :  { %2774 = vmatprep.subr.mxu0 %v3725_v53  ;;  %2804 = vmatprep.subr.mxu1 %v610_v14  ;;  %5374 = vst [vmem:[#allocation17_spill] sm:$0xff] %v3831_v55  ;;  %5375 = vst [vmem:[#allocation18_spill] sm:$0xff] %v3838_v7  ;;  %v3848_v14 = vand.u32 4294901760, %v161_v34  ;;  %v158_v18 = vsel %vm99_vm0, %v35_v46, 0  ;;  %v5377_v39 = vand.u32 4294901760, %v3810_v41  ;;  %v3873_v53 = vand.u32 4294901760, %v113_v6 }
  0x24   :  { %v518_v59 = vsub.f32 %v3802_v31, %v5255_v42  ;;  %v3867_v42 = vsub.f32 %v116_v48, %v3831_v55  ;;  %v16_v46 = vld [vmem:[%s5230_s0] sm:$0x1] }
  0x25   :  { %5376 = vst [vmem:[#allocation19_spill] sm:$0xff] %v3848_v14  ;;  %v637_v45 = vsub.f32 %v3810_v41, %v5377_v39  ;;  %5379 = vst [vmem:[#allocation21_spill] sm:$0xff] %v3873_v53  ;;  %v3876_v39 = vand.u32 4294901760, %v158_v18  ;;  %v3881_v41 = vsub.f32 %v161_v34, %v3848_v14 }
  0x26   :  { %2775 = vmatpush3.xpose.msra.mxu0 %v3752_v19  ;;  %2805 = vmatpush3.xpose.msra.mxu1 %v498_v63  ;;  %5378 = vst [vmem:[#allocation20_spill] sm:$0xff] %v3867_v42  ;;  %v512_v63 = vand.u32 4294901760, %v511_v61  ;;  %v631_v19 = vand.u32 4294901760, %v630_v29  ;;  %v519_v61 = vand.u32 4294901760, %v518_v59  ;;  %v5382_v29 = vand.u32 4294901760, %v3829_v32 }
  0x27   :  { %2776 = vmatprep.subr.mxu0 %v3754_v12  ;;  %2806 = vmatprep.subr.mxu1 %v617_v44  ;;  %v34_v44 = vld [vmem:[%s5232_s2 + $0x88] sm:$0xff]  ;;  %5380 = vst [vmem:[#allocation22_spill] sm:$0xff] %v3876_v39  ;;  %v110_v12 = vsel %vm99_vm0, %v19_v52, 0  ;;  %5381 = vst [vmem:[#allocation23_spill] sm:$0xff] %v3881_v41  ;;  %v101_v52 = vsel %vm99_vm0, %v16_v46, 0  ;;  %v3906_v46 = vsub.f32 %v113_v6, %v3873_v53 }
  0x28   :  { %v155_v48 = vsel %vm99_vm0, %v34_v44, 0  ;;  %v5383_v44 = vand.u32 4294901760, %v3838_v7  ;;  %v3897_v31 = vand.u32 4294901760, %v101_v52  ;;  %v3900_v59 = vand.u32 4294901760, %v110_v12 }
  0x29   :  { %v3912_v49 = vsub.f32 %v158_v18, %v3876_v39 }
  0x2a   :  { %2777 = vmatpush3.xpose.msra.mxu0 %v3774_v5  ;;  %2807 = vmatpush3.xpose.msra.mxu1 %v505_v47  ;;  %v18_v47 = vld [vmem:[%s5232_s2 + $0x8] sm:$0xff]  ;;  %v525_v5 = vsub.f32 %v3829_v32, %v5382_v29  ;;  %v644_v34 = vsub.f32 %v3838_v7, %v5383_v44  ;;  %v3902_v29 = vand.u32 4294901760, %v155_v48 }
  0x2b   :  { %2778 = vmatprep.subr.mxu0 %v3779_v60  ;;  %2808 = vmatprep.subr.mxu1 %v624_v28  ;;  %v33_v28 = vld [vmem:[%s5232_s2 + $0x80] sm:$0xff]  ;;  %v638_v60 = vand.u32 4294901760, %v637_v45  ;;  %v107_v32 = vsel %vm99_vm0, %v18_v47, 0 }
  0x2c   :  { %5384 = vst [vmem:[#allocation24_spill] sm:$0xff] %v3902_v29  ;;  %v152_v44 = vsel %vm99_vm0, %v33_v28, 0  ;;  %v526_v47 = vand.u32 4294901760, %v525_v5  ;;  %2824 = vmatprep.mubr.f32.mxu1 %v3897_v31  ;;  %v645_v6 = vand.u32 4294901760, %v644_v34  ;;  %v3935_v34 = vsub.f32 %v110_v12, %v3900_v59 }
  0x2d   :  { %v3945_v28 = vsub.f32 %v155_v48, %v3902_v29  ;;  %v5388_v12 = vand.u32 4294901760, %v3906_v46 }
  0x2e   :  { %2779 = vmatpush3.xpose.msra.mxu0 %v3799_v4  ;;  %2809 = vmatpush3.xpose.msra.mxu1 %v512_v63  ;;  %v17_v63 = vld [vmem:[%s5232_s2] sm:$0xff]  ;;  %v3918_v4 = vsub.f32 %v101_v52, %v3897_v31  ;;  %v3931_v52 = vand.u32 4294901760, %v152_v44 }
  0x2f   :  { %2780 = vmatprep.subr.mxu0 %v3804_v2  ;;  %2810 = vmatprep.subr.mxu1 %v631_v19  ;;  %v5385_v19 = vand.u32 4294901760, %v3867_v42  ;;  %v3924_v2 = vand.u32 4294901760, %v107_v32  ;;  %v104_v5 = vsel %vm99_vm0, %v17_v63, 0 }
  0x30   :  { %v3927_v18 = vand.u32 4294901760, %v3918_v4 }
  0x31   :  { %v532_v45 = vsub.f32 %v3867_v42, %v5385_v19  ;;  %v5386_v19 = vand.u32 4294901760, %v3881_v41  ;;  %v3957_v7 = vsub.f32 %v107_v32, %v3924_v2 }
  0x32   :  { %2781 = vmatpush3.xpose.msra.mxu0 %v3831_v55  ;;  %2811 = vmatpush3.xpose.msra.mxu1 %v519_v61  ;;  %v443_v61 = vsub.f32 %v3918_v4, %v3927_v18 }
  0x33   :  { %2782 = vmatprep.subr.mxu0 %v3848_v14  ;;  %2812 = vmatprep.subr.mxu1 %v638_v60  ;;  %v651_v42 = vsub.f32 %v3881_v41, %v5386_v19  ;;  %v533_v55 = vand.u32 4294901760, %v532_v45  ;;  %v539_v60 = vsub.f32 %v3906_v46, %v5388_v12  ;;  %v3953_v14 = vand.u32 4294901760, %v104_v5  ;;  %5389 = vst [vmem:[#allocation26_spill] sm:$0xff] %v3957_v7 }
  0x34   :  { %v3947_v63 = vand.u32 4294901760, %v443_v61  ;;  %v5286_v19 = vand.u32 4294901760, %v3935_v34  ;;  %v5390_v45 = vand.u32 4294901760, %v3912_v49 }
  0x35   :  { %v652_v48 = vand.u32 4294901760, %v651_v42  ;;  %v540_v32 = vand.u32 4294901760, %v539_v60  ;;  %v5290_v42 = vand.u32 4294901760, %v3957_v7  ;;  %v3974_v12 = vsub.f32 %v104_v5, %v3953_v14 }
  0x36   :  { %5387 = vst [vmem:[#allocation25_spill] sm:$0xff] %v3947_v63  ;;  %2783 = vmatpush3.xpose.msra.mxu0 %v3873_v53  ;;  %2813 = vmatpush3.xpose.msra.mxu1 %v526_v47  ;;  %v658_v61 = vsub.f32 %v3912_v49, %v5390_v45  ;;  %v5287_v47 = vand.u32 4294901760, %v3945_v28  ;;  %v3965_v53 = vsub.f32 %v152_v44, %v3931_v52 }
  0x37   :  { %2784 = vmatprep.subr.mxu0 %v3876_v39  ;;  %2814 = vmatprep.subr.mxu1 %v645_v6  ;;  %v546_v6 = vsub.f32 %v3935_v34, %v5286_v19  ;;  %v553_v19 = vsub.f32 %v3957_v7, %v5290_v42  ;;  %v5288_v5 = vand.u32 4294901760, %v3974_v12  ;;  %v5402_v42 = vld [vmem:[#allocation12_spill] sm:$0xff] }
  0x38   :  { %2790 = vmatprep.mubr.f32.mxu0 %v3947_v63  ;;  %v659_v44 = vand.u32 4294901760, %v658_v61  ;;  %v665_v45 = vsub.f32 %v3945_v28, %v5287_v47 }
  0x39   :  { %v547_v60 = vand.u32 4294901760, %v546_v6  ;;  %v554_v47 = vand.u32 4294901760, %v553_v19  ;;  %v5391_v19 = vld [vmem:[#allocation13_spill] sm:$0xff] }
  0x3a   :  { %2785 = vmatpush3.xpose.msra.mxu0 %v3900_v59  ;;  %2815 = vmatpush3.xpose.msra.mxu1 %v533_v55  ;;  %v5289_v55 = vand.u32 4294901760, %v3965_v53 }
  0x3b   :  { %2786 = vmatprep.subr.mxu0 %v3902_v29  ;;  %2816 = vmatprep.subr.mxu1 %v652_v48  ;;  %v666_v48 = vand.u32 4294901760, %v665_v45  ;;  %v5393_v45 = vld [vmem:[#allocation15_spill] sm:$0xff] }
  0x3c   :  { %v672_v61 = vsub.f32 %v3965_v53, %v5289_v55  ;;  %v5401_v55 = vld [vmem:[#allocation11_spill] sm:$0xff] }
  0x3e   :  { %2787 = vmatpush3.xpose.msra.mxu0 %v3924_v2  ;;  %2817 = vmatpush3.xpose.msra.mxu1 %v540_v32  ;;  %v560_v32 = vsub.f32 %v3974_v12, %v5288_v5  ;;  %v673_v6 = vand.u32 4294901760, %v672_v61  ;;  %v5396_v61 = vld [vmem:[#allocation8_spill] sm:$0xff]  ;;  %v5400_v5 = vld [vmem:[#allocation10_spill] sm:$0xff] }
  0x3f   :  { %2788 = vmatprep.subr.mxu0 %v3931_v52  ;;  %2818 = vmatprep.subr.mxu1 %v659_v44 }
  0x40   :  { %v561_v44 = vand.u32 4294901760, %v560_v32  ;;  %v5397_v32 = vld [vmem:[#allocation18_spill] sm:$0xff] }
  0x42   :  { %2789 = vmatpush3.xpose.msra.mxu0 %v3953_v14  ;;  %2819 = vmatpush3.xpose.msra.mxu1 %v547_v60  ;;  %v5394_v60 = vld [vmem:[#allocation7_spill] sm:$0xff] }
  0x43   :  { %2820 = vmatprep.subr.mxu1 %v666_v48  ;;  %2826 = vmatprep.subr.mxu0 %v3574_v21  ;;  %v5395_v48 = vld [vmem:[#allocation16_spill] sm:$0xff] }
  0x45   :  { %2791 = vmatmul.mubr.f32.vlgmr.msra.gmra.mxu0 %v3947_v63  ;;  %v5403_v63 = vld [vmem:[#allocation14_spill] sm:$0xff] }
  0x46   :  { %2821 = vmatpush3.xpose.msra.mxu1 %v554_v47  ;;  %2827 = vmatpush3.xpose.msra.mxu0 %v3579_v23  ;;  %v5392_v47 = vld [vmem:[#allocation6_spill] sm:$0xff] }
  0x47   :  { %2822 = vmatprep.subr.mxu1 %v673_v6  ;;  %2828 = vmatprep.subr.mxu0 %v3583_v24  ;;  %v5398_v6 = vld [vmem:[#allocation9_spill] sm:$0xff] }
  0x48   :  { %2858 = vmatprep.mubr.f32.mxu0 %v3918_v4 }
  0x4a   :  { %2823 = vmatpush3.xpose.msra.mxu1 %v561_v44  ;;  %2829 = vmatpush3.xpose.msra.mxu0 %v3587_v26  ;;  %v5399_v44 = vld [vmem:[#allocation20_spill] sm:$0xff] }
  0x4b   :  { %2830 = vmatprep.subr.mxu0 %v3603_v35  ;;  %2860 = vmatprep.subr.mxu1 %v3549_v9 }
  0x4d   :  { %2825 = vmatmul.mubr.f32.vlgmr.msra.gmra.mxu1 %v3897_v31 }
  0x4e   :  { %2831 = vmatpush3.xpose.msra.mxu0 %v3616_v40  ;;  %2861 = vmatpush3.xpose.msra.mxu1 %v3551_v10 }
  0x4f   :  { %2832 = vmatprep.subr.mxu0 %v3646_v56  ;;  %2862 = vmatprep.subr.mxu1 %v3553_v11 }
  0x50   :  { %2892 = vmatprep.mubr.f32.mxu1 %v3927_v18 }
  0x52   :  { %2833 = vmatpush3.xpose.msra.mxu0 %v3650_v58  ;;  %2863 = vmatpush3.xpose.msra.mxu1 %v3562_v15 }
  0x53   :  { %2834 = vmatprep.subr.mxu0 %v3663_v0  ;;  %2864 = vmatprep.subr.mxu1 %v3571_v20 }
  0x56   :  { %2835 = vmatpush3.xpose.msra.mxu0 %v3676_v8  ;;  %2865 = vmatpush3.xpose.msra.mxu1 %v3576_v22 }
  0x57   :  { %2836 = vmatprep.subr.mxu0 %v3698_v27  ;;  %2866 = vmatprep.subr.mxu1 %v3595_v30 }
  0x5a   :  { %2837 = vmatpush3.xpose.msra.mxu0 %v3705_v38  ;;  %2867 = vmatpush3.xpose.msra.mxu1 %v3599_v33 }
  0x5b   :  { %2838 = vmatprep.subr.mxu0 %v3722_v51  ;;  %2868 = vmatprep.subr.mxu1 %v3625_v43 }
  0x5e   :  { %2839 = vmatpush3.xpose.msra.mxu0 %v3729_v57  ;;  %2869 = vmatpush3.xpose.msra.mxu1 %v3640_v54 }
  0x5f   :  { %2840 = vmatprep.subr.mxu0 %v3741_v1  ;;  %2870 = vmatprep.subr.mxu1 %v3659_v62 }
  0x62   :  { %2841 = vmatpush3.xpose.msra.mxu0 %v3757_v36  ;;  %2871 = vmatpush3.xpose.msra.mxu1 %v3667_v3 }
  0x63   :  { %2842 = vmatprep.subr.mxu0 %v3769_v50  ;;  %2872 = vmatprep.subr.mxu1 %v3685_v16 }
  0x66   :  { %2843 = vmatpush3.xpose.msra.mxu0 %v3785_v25  ;;  %2873 = vmatpush3.xpose.msra.mxu1 %v3687_v17 }
  0x67   :  { %2844 = vmatprep.subr.mxu0 %v3789_v13  ;;  %2874 = vmatprep.subr.mxu1 %v3702_v37 }
  0x6a   :  { %2845 = vmatpush3.xpose.msra.mxu0 %v5391_v19  ;;  %2875 = vmatpush3.xpose.msra.mxu1 %v5392_v47 }
  0x6b   :  { %2846 = vmatprep.subr.mxu0 %v5393_v45  ;;  %2876 = vmatprep.subr.mxu1 %v5394_v60 }
  0x6e   :  { %2847 = vmatpush3.xpose.msra.mxu0 %v5395_v48  ;;  %2877 = vmatpush3.xpose.msra.mxu1 %v5396_v61 }
  0x6f   :  { %2848 = vmatprep.subr.mxu0 %v5397_v32  ;;  %2878 = vmatprep.subr.mxu1 %v5398_v6  ;;  %v5404_v32 = vld [vmem:[#allocation17_spill] sm:$0xff] }
  0x72   :  { %2849 = vmatpush3.xpose.msra.mxu0 %v5399_v44  ;;  %2879 = vmatpush3.xpose.msra.mxu1 %v5400_v5  ;;  %v5405_v44 = vld [vmem:[#allocation19_spill] sm:$0xff] }
  0x73   :  { %2850 = vmatprep.subr.mxu0 %v3881_v41  ;;  %2880 = vmatprep.subr.mxu1 %v5401_v55  ;;  %v5406_v41 = vld [vmem:[#allocation21_spill] sm:$0xff] }
  0x76   :  { %2851 = vmatpush3.xpose.msra.mxu0 %v3906_v46  ;;  %2881 = vmatpush3.xpose.msra.mxu1 %v5402_v42 }
  0x77   :  { %2852 = vmatprep.subr.mxu0 %v3912_v49  ;;  %2882 = vmatprep.subr.mxu1 %v5403_v63 }
  0x7a   :  { %2853 = vmatpush3.xpose.msra.mxu0 %v3935_v34  ;;  %2883 = vmatpush3.xpose.msra.mxu1 %v5404_v32  ;;  %v5407_v32 = vand.u32 4294901760, %v3574_v21  ;;  %v5411_v21 = vand.u32 4294901760, %v3603_v35  ;;  %v5416_v35 = vand.u32 4294901760, %v3676_v8  ;;  %v5431_v8 = vld [vmem:[#allocation20_spill] sm:$0xff] }
  0x7b   :  { %2854 = vmatprep.subr.mxu0 %v3945_v28  ;;  %2884 = vmatprep.subr.mxu1 %v5405_v44 }
  0x7e   :  { %2855 = vmatpush3.xpose.msra.mxu0 %v3957_v7  ;;  %2885 = vmatpush3.xpose.msra.mxu1 %v5406_v41  ;;  %v5408_v7 = vand.u32 4294901760, %v3579_v23  ;;  %v5412_v23 = vand.u32 4294901760, %v3616_v40  ;;  %v5424_v40 = vand.u32 4294901760, %v3785_v25 }
  0x7f   :  { %2856 = vmatprep.subr.mxu0 %v3965_v53  ;;  %2886 = vmatprep.subr.mxu1 %v3876_v39  ;;  %v5409_v39 = vand.u32 4294901760, %v3583_v24  ;;  %v5413_v24 = vand.u32 4294901760, %v3646_v56  ;;  %v5427_v56 = vand.u32 4294901760, %v5393_v45  ;;  %v77_v45 = vld [vmem:[%s5232_s2 + $0x1e0] sm:$0xff] }
  0x82   :  { %2857 = vmatpush3.xpose.msra.mxu0 %v3974_v12  ;;  %2887 = vmatpush3.xpose.msra.mxu1 %v3900_v59 }
  0x83   :  { %2888 = vmatprep.subr.mxu1 %v3902_v29  ;;  %2894 = vmatprep.subr.mxu0 %v5407_v32  ;;  %v5410_v29 = vand.u32 4294901760, %v3587_v26  ;;  %v5414_v26 = vand.u32 4294901760, %v3650_v58  ;;  %v5428_v58 = vand.u32 4294901760, %v5395_v48 }
  0x85   :  { %2859 = vmatmul.mubr.f32.vlgmr.msra.gmra.mxu0 %v3918_v4 }
  0x86   :  { %2889 = vmatpush3.xpose.msra.mxu1 %v3924_v2  ;;  %2895 = vmatpush3.xpose.msra.mxu0 %v5408_v7  ;;  %v78_v7 = vld [vmem:[%s5232_s2 + $0x1e8] sm:$0xff] }
  0x87   :  { %2890 = vmatprep.subr.mxu1 %v3931_v52  ;;  %2896 = vmatprep.subr.mxu0 %v5409_v39 }
  0x88   :  { %2926 = vmatprep.mubr.f32.mxu0 %v3897_v31 }
  0x8a   :  { %2891 = vmatpush3.xpose.msra.mxu1 %v3953_v14  ;;  %2897 = vmatpush3.xpose.msra.mxu0 %v5410_v29  ;;  %v5437_v29 = vand.u32 4294901760, %v3935_v34  ;;  %v62_v34 = vld [vmem:[%s5232_s2 + $0x168] sm:$0xff] }
  0x8b   :  { %2898 = vmatprep.subr.mxu0 %v5411_v21  ;;  %2928 = vmatprep.subr.mxu1 %v3549_v9  ;;  %v5415_v9 = vand.u32 4294901760, %v3663_v0  ;;  %v239_v32 = vsel %vm99_vm0, %v62_v34, 0  ;;  %v5443_v21 = vld [vmem:[#allocation22_spill] sm:$0xff] }
  0x8d   :  { %2893 = vmatmul.mubr.f32.vlgmr.msra.gmra.mxu1 %v3927_v18 }
  0x8e   :  { %2899 = vmatpush3.xpose.msra.mxu0 %v5412_v23  ;;  %2929 = vmatpush3.xpose.msra.mxu1 %v3551_v10  ;;  %v5417_v10 = vand.u32 4294901760, %v3698_v27  ;;  %v61_v23 = vld [vmem:[%s5232_s2 + $0x160] sm:$0xff] }
  0x8f   :  { %2900 = vmatprep.subr.mxu0 %v5413_v24  ;;  %2930 = vmatprep.subr.mxu1 %v3553_v11  ;;  %v5418_v11 = vand.u32 4294901760, %v3705_v38  ;;  %v79_v38 = vld [vmem:[%s5232_s2 + $0x1f0] sm:$0xff] }
  0x90   :  { %2960 = vmatprep.mubr.f32.mxu1 %v3897_v31 }
  0x92   :  { %2901 = vmatpush3.xpose.msra.mxu0 %v5414_v26  ;;  %2931 = vmatpush3.xpose.msra.mxu1 %v3562_v15  ;;  %v5419_v15 = vand.u32 4294901760, %v3722_v51  ;;  %v4209_v26 = vand.u32 4294901760, %v239_v32 }
  0x93   :  { %2902 = vmatprep.subr.mxu0 %v5415_v9  ;;  %2932 = vmatprep.subr.mxu1 %v3571_v20  ;;  %v5420_v20 = vand.u32 4294901760, %v3729_v57 }
  0x96   :  { %2903 = vmatpush3.xpose.msra.mxu0 %v5416_v35  ;;  %2933 = vmatpush3.xpose.msra.mxu1 %v3576_v22  ;;  %v5421_v22 = vand.u32 4294901760, %v3741_v1  ;;  %v5436_v1 = vand.u32 4294901760, %v3912_v49  ;;  %v5444_v35 = vand.u32 4294901760, %v3974_v12 }
  0x97   :  { %2904 = vmatprep.subr.mxu0 %v5417_v10  ;;  %2934 = vmatprep.subr.mxu1 %v3595_v30  ;;  %v5422_v30 = vand.u32 4294901760, %v3757_v36  ;;  %v290_v36 = vsel %vm99_vm0, %v79_v38, 0  ;;  %v74_v38 = vld [vmem:[%s5232_s2 + $0x1c8] sm:$0xff] }
  0x98   :  { %v4168_v49 = vand.u32 4294901760, %v290_v36 }
  0x9a   :  { %2905 = vmatpush3.xpose.msra.mxu0 %v5418_v11  ;;  %2935 = vmatpush3.xpose.msra.mxu1 %v3599_v33  ;;  %v5423_v33 = vand.u32 4294901760, %v3769_v50  ;;  %v5435_v50 = vand.u32 4294901760, %v3906_v46  ;;  %v5438_v46 = vld [vmem:[#allocation17_spill] sm:$0xff] }
  0x9b   :  { %2906 = vmatprep.subr.mxu0 %v5419_v15  ;;  %2936 = vmatprep.subr.mxu1 %v3625_v43  ;;  %v5425_v43 = vand.u32 4294901760, %v3789_v13  ;;  %v63_v13 = vld [vmem:[%s5232_s2 + $0x170] sm:$0xff]  ;;  %v236_v15 = vsel %vm99_vm0, %v61_v23, 0 }
  0x9e   :  { %2907 = vmatpush3.xpose.msra.mxu0 %v5420_v20  ;;  %2937 = vmatpush3.xpose.msra.mxu1 %v3640_v54  ;;  %v5426_v54 = vand.u32 4294901760, %v5391_v19 }
  0x9f   :  { %2908 = vmatprep.subr.mxu0 %v5421_v22  ;;  %2938 = vmatprep.subr.mxu1 %v3659_v62  ;;  %v5429_v62 = vld [vmem:[#allocation18_spill] sm:$0xff]  ;;  %v5445_v22 = vld [vmem:[#allocation24_spill] sm:$0xff] }
  0xa0   :  { %v5430_v0 = vand.u32 4294901760, %v5429_v62 }
  0xa2   :  { %2909 = vmatpush3.xpose.msra.mxu0 %v5422_v30  ;;  %2939 = vmatpush3.xpose.msra.mxu1 %v3667_v3  ;;  %v80_v3 = vld [vmem:[%s5232_s2 + $0x1f8] sm:$0xff] }
  0xa3   :  { %2910 = vmatprep.subr.mxu0 %v5423_v33  ;;  %2940 = vmatprep.subr.mxu1 %v3685_v16  ;;  %v5432_v16 = vand.u32 4294901760, %v5431_v8  ;;  %v293_v27 = vsel %vm99_vm0, %v80_v3, 0  ;;  %v75_v33 = vld [vmem:[%s5232_s2 + $0x1d0] sm:$0xff] }
  0xa4   :  { %v4150_v51 = vand.u32 4294901760, %v293_v27  ;;  %v278_v8 = vsel %vm99_vm0, %v75_v33, 0  ;;  %v72_v33 = vld [vmem:[%s5232_s2 + $0x1b8] sm:$0xff] }
  0xa6   :  { %2911 = vmatpush3.xpose.msra.mxu0 %v5424_v40  ;;  %2941 = vmatpush3.xpose.msra.mxu1 %v3687_v17  ;;  %v5433_v17 = vld [vmem:[#allocation23_spill] sm:$0xff]  ;;  %v4239_v40 = vsub.f32 %v239_v32, %v4209_v26 }
  0xa7   :  { %2912 = vmatprep.subr.mxu0 %v5425_v43  ;;  %2942 = vmatprep.subr.mxu1 %v3702_v37  ;;  %v5434_v25 = vand.u32 4294901760, %v5433_v17  ;;  %v64_v37 = vld [vmem:[%s5232_s2 + $0x178] sm:$0xff]  ;;  %v4241_v43 = vand.u32 4294901760, %v236_v15  ;;  %v59_v17 = vld [vmem:[%s5232_s2 + $0x150] sm:$0xff] }
  0xa8   :  { %v245_v57 = vsel %vm99_vm0, %v64_v37, 0  ;;  %v5304_v37 = vand.u32 4294901760, %v4239_v40 }
  0xa9   :  { %v4163_v39 = vand.u32 4294901760, %v245_v57 }
  0xaa   :  { %2913 = vmatpush3.xpose.msra.mxu0 %v5426_v54  ;;  %2943 = vmatpush3.xpose.msra.mxu1 %v5392_v47  ;;  %v1324_v34 = vsub.f32 %v4239_v40, %v5304_v37 }
  0xab   :  { %2914 = vmatprep.subr.mxu0 %v5427_v56  ;;  %2944 = vmatprep.subr.mxu1 %v5394_v60  ;;  %v4182_v19 = vsub.f32 %v245_v57, %v4163_v39  ;;  %v5440_v60 = vld [vmem:[#allocation26_spill] sm:$0xff] }
  0xad   :  { %v5310_v9 = vand.u32 4294901760, %v4182_v19 }
  0xae   :  { %2915 = vmatpush3.xpose.msra.mxu0 %v5428_v58  ;;  %2945 = vmatpush3.xpose.msra.mxu1 %v5396_v61 }
  0xaf   :  { %2916 = vmatprep.subr.mxu0 %v5430_v0  ;;  %2946 = vmatprep.subr.mxu1 %v5398_v6  ;;  %v4197_v6 = vsub.f32 %v290_v36, %v4168_v49  ;;  %v1310_v58 = vsub.f32 %v4182_v19, %v5310_v9  ;;  %v230_v36 = vsel %vm99_vm0, %v59_v17, 0 }
  0xb1   :  { %v5309_v11 = vand.u32 4294901760, %v4197_v6 }
  0xb2   :  { %2917 = vmatpush3.xpose.msra.mxu0 %v5432_v16  ;;  %2947 = vmatpush3.xpose.msra.mxu1 %v5400_v5  ;;  %v287_v5 = vsel %vm99_vm0, %v78_v7, 0 }
  0xb3   :  { %2918 = vmatprep.subr.mxu0 %v5434_v25  ;;  %2948 = vmatprep.subr.mxu1 %v5401_v55  ;;  %v5439_v55 = vand.u32 4294901760, %v3945_v28  ;;  %v5441_v28 = vand.u32 4294901760, %v5440_v60  ;;  %v4192_v48 = vand.u32 4294901760, %v287_v5  ;;  %v1429_v62 = vsub.f32 %v4197_v6, %v5309_v11  ;;  %v5446_v25 = vld [vmem:[#allocation25_spill] sm:$0xff] }
  0xb5   :  { %v4224_v20 = vsub.f32 %v287_v5, %v4192_v48 }
  0xb6   :  { %2919 = vmatpush3.xpose.msra.mxu0 %v5435_v50  ;;  %2949 = vmatpush3.xpose.msra.mxu1 %v5402_v42  ;;  %v4172_v42 = vsub.f32 %v293_v27, %v4150_v51  ;;  %v4267_v27 = vsub.f32 %v236_v15, %v4241_v43  ;;  %v1311_v50 = vand.u32 4294901760, %v1310_v58  ;;  %v1325_v15 = vand.u32 4294901760, %v1324_v34 }
  0xb7   :  { %2920 = vmatprep.subr.mxu0 %v5436_v1  ;;  %2950 = vmatprep.subr.mxu1 %v5403_v63  ;;  %v242_v63 = vsel %vm99_vm0, %v63_v13, 0  ;;  %v5306_v0 = vand.u32 4294901760, %v4224_v20  ;;  %v4280_v1 = vand.u32 4294901760, %v278_v8  ;;  %v1430_v13 = vand.u32 4294901760, %v1429_v62 }
  0xb8   :  { %v4184_v47 = vand.u32 4294901760, %v242_v63  ;;  %v5311_v61 = vand.u32 4294901760, %v4172_v42  ;;  %v5301_v60 = vand.u32 4294901760, %v4267_v27 }
  0xb9   :  { %v1436_v7 = vsub.f32 %v4224_v20, %v5306_v0 }
  0xba   :  { %2921 = vmatpush3.xpose.msra.mxu0 %v5437_v29  ;;  %2951 = vmatpush3.xpose.msra.mxu1 %v5438_v46  ;;  %v4207_v24 = vsub.f32 %v242_v63, %v4184_v47  ;;  %v1422_v10 = vsub.f32 %v4172_v42, %v5311_v61  ;;  %v58_v46 = vld [vmem:[%s5232_s2 + $0x148] sm:$0xff]  ;;  %v73_v63 = vld [vmem:[%s5232_s2 + $0x1c0] sm:$0xff] }
  0xbb   :  { %2922 = vmatprep.subr.mxu0 %v5439_v55  ;;  %2952 = vmatprep.subr.mxu1 %v5405_v44  ;;  %v5442_v44 = vand.u32 4294901760, %v3965_v53  ;;  %v76_v53 = vld [vmem:[%s5232_s2 + $0x1d8] sm:$0xff]  ;;  %v275_v55 = vsel %vm99_vm0, %v74_v38, 0  ;;  %v227_v32 = vsel %vm99_vm0, %v58_v46, 0  ;;  %v1437_v23 = vand.u32 4294901760, %v1436_v7  ;;  %v71_v46 = vld [vmem:[%s5232_s2 + $0x1b0] sm:$0xff] }
  0xbc   :  { %v281_v12 = vsel %vm99_vm0, %v76_v53, 0  ;;  %v5308_v54 = vand.u32 4294901760, %v4207_v24  ;;  %v1423_v56 = vand.u32 4294901760, %v1422_v10  ;;  %v4318_v53 = vand.u32 4294901760, %v275_v55  ;;  %v57_v10 = vld [vmem:[%s5232_s2 + $0x140] sm:$0xff] }
  0xbd   :  { %v4255_v3 = vand.u32 4294901760, %v281_v12  ;;  %v269_v38 = vsel %vm99_vm0, %v72_v33, 0 }
  0xbe   :  { %2923 = vmatpush3.xpose.msra.mxu0 %v5441_v28  ;;  %2953 = vmatpush3.xpose.msra.mxu1 %v5406_v41  ;;  %v284_v41 = vsel %vm99_vm0, %v77_v45, 0  ;;  %v4302_v45 = vand.u32 4294901760, %v230_v36 }
  0xbf   :  { %2924 = vmatprep.subr.mxu0 %v5442_v44  ;;  %2954 = vmatprep.subr.mxu1 %v5443_v21  ;;  %v4228_v30 = vand.u32 4294901760, %v284_v41  ;;  %v272_v44 = vsel %vm99_vm0, %v73_v63, 0  ;;  %v4312_v21 = vsub.f32 %v278_v8, %v4280_v1 }
  0xc1   :  { %v4260_v16 = vsub.f32 %v284_v41, %v4228_v30  ;;  %v5297_v62 = vand.u32 4294901760, %v4312_v21 }
  0xc2   :  { %2925 = vmatpush3.xpose.msra.mxu0 %v5444_v35  ;;  %2955 = vmatpush3.xpose.msra.mxu1 %v3900_v59  ;;  %v60_v59 = vld [vmem:[%s5232_s2 + $0x158] sm:$0xff] }
  0xc3   :  { %2956 = vmatprep.subr.mxu1 %v5445_v22  ;;  %2962 = vmatprep.subr.mxu0 %v4150_v51  ;;  %v5303_v29 = vand.u32 4294901760, %v4260_v16  ;;  %v4326_v22 = vsub.f32 %v230_v36, %v4302_v45  ;;  %v1457_v34 = vsub.f32 %v4312_v21, %v5297_v62 }
  0xc5   :  { %2927 = vmatmul.mubr.f32.vlgmr.msra.gmra.mxu0 %v3897_v31  ;;  %v1443_v41 = vsub.f32 %v4260_v16, %v5303_v29  ;;  %v5299_v7 = vand.u32 4294901760, %v4326_v22  ;;  %v1458_v62 = vand.u32 4294901760, %v1457_v34 }
  0xc6   :  { %2957 = vmatpush3.xpose.msra.mxu1 %v3924_v2  ;;  %2963 = vmatpush3.xpose.msra.mxu0 %v4163_v39  ;;  %v233_v2 = vsel %vm99_vm0, %v60_v59, 0  ;;  %v4330_v59 = vand.u32 4294901760, %v272_v44 }
  0xc7   :  { %2958 = vmatprep.subr.mxu1 %v3931_v52  ;;  %2964 = vmatprep.subr.mxu0 %v4168_v49  ;;  %v1317_v52 = vsub.f32 %v4207_v24, %v5308_v54  ;;  %v4278_v57 = vand.u32 4294901760, %v233_v2  ;;  %v1444_v8 = vand.u32 4294901760, %v1443_v41 }
  0xc8   :  { %2994 = vmatprep.mubr.f32.mxu0 %v5446_v25  ;;  %5447 = vst [vmem:[#allocation13_spill] sm:$0xff] %v4330_v59  ;;  %v4363_v63 = vsub.f32 %v272_v44, %v4330_v59 }
  0xc9   :  { %v1318_v5 = vand.u32 4294901760, %v1317_v52  ;;  %v4307_v28 = vsub.f32 %v233_v2, %v4278_v57  ;;  %v224_v2 = vsel %vm99_vm0, %v57_v10, 0  ;;  %v4347_v52 = vsub.f32 %v275_v55, %v4318_v53 }
  0xca   :  { %2959 = vmatpush3.xpose.msra.mxu1 %v3953_v14  ;;  %2965 = vmatpush3.xpose.msra.mxu0 %v4184_v47  ;;  %v4289_v14 = vsub.f32 %v281_v12, %v4255_v3  ;;  %v4328_v12 = vand.u32 4294901760, %v227_v32  ;;  %v266_v10 = vsel %vm99_vm0, %v71_v46, 0 }
  0xcb   :  { %2966 = vmatprep.subr.mxu0 %v4192_v48  ;;  %2996 = vmatprep.subr.mxu1 %v1423_v56  ;;  %v1331_v56 = vsub.f32 %v4267_v27, %v5301_v60  ;;  %v5298_v58 = vand.u32 4294901760, %v4307_v28  ;;  %v5302_v44 = vand.u32 4294901760, %v4347_v52 }
  0xcc   :  { %v5300_v35 = vand.u32 4294901760, %v4289_v14  ;;  %v4354_v36 = vsub.f32 %v227_v32, %v4328_v12 }
  0xcd   :  { %2961 = vmatmul.mubr.f32.vlgmr.msra.gmra.mxu1 %v3897_v31  ;;  %v1332_v55 = vand.u32 4294901760, %v1331_v56  ;;  %v1345_v56 = vsub.f32 %v4326_v22, %v5299_v7  ;;  %v4399_v7 = vand.u32 4294901760, %v266_v10 }
  0xce   :  { %2967 = vmatpush3.xpose.msra.mxu0 %v4209_v26  ;;  %2997 = vmatpush3.xpose.msra.mxu1 %v1311_v50  ;;  %v1450_v17 = vsub.f32 %v4289_v14, %v5300_v35  ;;  %v56_v50 = vld [vmem:[%s5232_s2 + $0x138] sm:$0xff] }
  0xcf   :  { %2968 = vmatprep.subr.mxu0 %v4228_v30  ;;  %2998 = vmatprep.subr.mxu1 %v1430_v13  ;;  %v4356_v13 = vand.u32 4294901760, %v224_v2  ;;  %v221_v41 = vsel %vm99_vm0, %v56_v50, 0  ;;  %v70_v50 = vld [vmem:[%s5232_s2 + $0x1a8] sm:$0xff]  ;;  %5451 = vst [vmem:[#allocation16_spill] sm:$0xff] %v4399_v7  ;;  %v4432_v54 = vsub.f32 %v266_v10, %v4399_v7 }
  0xd0   :  { %3028 = vmatprep.mubr.f32.mxu1 %v3897_v31  ;;  %v1451_v32 = vand.u32 4294901760, %v1450_v17  ;;  %v5307_v17 = vand.u32 4294901760, %v4363_v63  ;;  %v263_v34 = vsel %vm99_vm0, %v70_v50, 0 }
  0xd1   :  { %5448 = vst [vmem:[#allocation6_spill] sm:$0xff] %v4356_v13  ;;  %v4382_v33 = vsub.f32 %v224_v2, %v4356_v13  ;;  %v1464_v2 = vsub.f32 %v4347_v52, %v5302_v44  ;;  %v4428_v0 = vand.u32 4294901760, %v263_v34  ;;  %5454 = vst [vmem:[#allocation10_spill] sm:$0xff] %v4432_v54 }
  0xd2   :  { %2969 = vmatpush3.xpose.msra.mxu0 %v4241_v43  ;;  %2999 = vmatpush3.xpose.msra.mxu1 %v1318_v5  ;;  %v1338_v5 = vsub.f32 %v4307_v28, %v5298_v58  ;;  %v4393_v58 = vand.u32 4294901760, %v221_v41 }
  0xd3   :  { %2970 = vmatprep.subr.mxu0 %v4255_v3  ;;  %3000 = vmatprep.subr.mxu1 %v1437_v23  ;;  %v4373_v23 = vand.u32 4294901760, %v269_v38  ;;  %5453 = vst [vmem:[#allocation9_spill] sm:$0xff] %v4428_v0 }
  0xd4   :  { %v1339_v46 = vand.u32 4294901760, %v1338_v5  ;;  %5450 = vst [vmem:[#allocation7_spill] sm:$0xff] %v4393_v58  ;;  %v69_v5 = vld [vmem:[%s5232_s2 + $0x1a0] sm:$0xff]  ;;  %v4421_v29 = vsub.f32 %v221_v41, %v4393_v58 }
  0xd5   :  { %5449 = vst [vmem:[#allocation15_spill] sm:$0xff] %v4373_v23  ;;  %v4403_v60 = vsub.f32 %v269_v38, %v4373_v23  ;;  %v1471_v38 = vsub.f32 %v4363_v63, %v5307_v17  ;;  %v260_v50 = vsel %vm99_vm0, %v69_v5, 0  ;;  %v53_v41 = vld [vmem:[%s5232_s2 + $0x120] sm:$0xff] }
  0xd6   :  { %2971 = vmatpush3.xpose.msra.mxu0 %v4278_v57  ;;  %3001 = vmatpush3.xpose.msra.mxu1 %v1325_v15  ;;  %v55_v15 = vld [vmem:[%s5232_s2 + $0x130] sm:$0xff]  ;;  %v4445_v5 = vand.u32 4294901760, %v260_v50  ;;  %v5322_v9 = vand.u32 4294901760, %v4421_v29  ;;  %v212_v61 = vsel %vm99_vm0, %v53_v41, 0 }
  0xd7   :  { %2972 = vmatprep.subr.mxu0 %v4280_v1  ;;  %3002 = vmatprep.subr.mxu1 %v1444_v8  ;;  %v5305_v8 = vand.u32 4294901760, %v4354_v36  ;;  %v218_v35 = vsel %vm99_vm0, %v55_v15, 0  ;;  %v5312_v15 = vand.u32 4294901760, %v4382_v33  ;;  %v5315_v17 = vand.u32 4294901760, %v4403_v60 }
  0xd8   :  { %v4423_v37 = vand.u32 4294901760, %v218_v35  ;;  %5456 = vst [vmem:[#allocation12_spill] sm:$0xff] %v4445_v5  ;;  %v1472_v10 = vand.u32 4294901760, %v1471_v38  ;;  %v4468_v41 = vand.u32 4294901760, %v212_v61 }
  0xd9   :  { %v1352_v44 = vsub.f32 %v4354_v36, %v5305_v8  ;;  %v1465_v8 = vand.u32 4294901760, %v1464_v2 }
  0xda   :  { %2973 = vmatpush3.xpose.msra.mxu0 %v4302_v45  ;;  %3003 = vmatpush3.xpose.msra.mxu1 %v1332_v55  ;;  %v54_v55 = vld [vmem:[%s5232_s2 + $0x128] sm:$0xff]  ;;  %5452 = vst [vmem:[#allocation8_spill] sm:$0xff] %v4423_v37  ;;  %v4449_v11 = vsub.f32 %v218_v35, %v4423_v37  ;;  %v52_v35 = vld [vmem:[%s5232_s2 + $0x118] sm:$0xff]  ;;  %5460 = vst [vmem:[#allocation18_spill] sm:$0xff] %v4468_v41 }
  0xdb   :  { %2974 = vmatprep.subr.mxu0 %v4318_v53  ;;  %3004 = vmatprep.subr.mxu1 %v1451_v32  ;;  %v1346_v32 = vand.u32 4294901760, %v1345_v56  ;;  %v215_v56 = vsel %vm99_vm0, %v54_v55, 0  ;;  %v1353_v55 = vand.u32 4294901760, %v1352_v44  ;;  %v1478_v44 = vsub.f32 %v4403_v60, %v5315_v17 }
  0xdc   :  { %v4443_v2 = vand.u32 4294901760, %v215_v56  ;;  %5457 = vst [vmem:[#allocation14_spill] sm:$0xff] %v4449_v11  ;;  %v4474_v17 = vsub.f32 %v260_v50, %v4445_v5 }
  0xde   :  { %2975 = vmatpush3.xpose.msra.mxu0 %v4328_v12  ;;  %3005 = vmatpush3.xpose.msra.mxu1 %v1339_v46  ;;  %v68_v46 = vld [vmem:[%s5232_s2 + $0x198] sm:$0xff]  ;;  %5455 = vst [vmem:[#allocation11_spill] sm:$0xff] %v4443_v2  ;;  %v4466_v38 = vsub.f32 %v215_v56, %v4443_v2  ;;  %5461 = vst [vmem:[#allocation20_spill] sm:$0xff] %v4474_v17  ;;  %v4494_v56 = vsub.f32 %v212_v61, %v4468_v41 }
  0xdf   :  { %2976 = vmatprep.subr.mxu0 %v4330_v59  ;;  %3006 = vmatprep.subr.mxu1 %v1458_v62  ;;  %v1359_v62 = vsub.f32 %v4382_v33, %v5312_v15  ;;  %v5463_v59 = vand.u32 4294901760, %v4432_v54 }
  0xe0   :  { %5459 = vst [vmem:[#allocation21_spill] sm:$0xff] %v4466_v38  ;;  %5464 = vst [vmem:[#allocation17_spill] sm:$0xff] %v4494_v56 }
  0xe1   :  { %v1485_v50 = vsub.f32 %v4432_v54, %v5463_v59  ;;  %v66_v59 = vld [vmem:[%s5232_s2 + $0x188] sm:$0xff] }
  0xe2   :  { %2977 = vmatpush3.xpose.msra.mxu0 %v4356_v13  ;;  %3007 = vmatpush3.xpose.msra.mxu1 %v1346_v32  ;;  %v257_v13 = vsel %vm99_vm0, %v68_v46, 0  ;;  %v4460_v32 = vsub.f32 %v263_v34, %v4428_v0  ;;  %v1360_v34 = vand.u32 4294901760, %v1359_v62  ;;  %v1366_v46 = vsub.f32 %v4421_v29, %v5322_v9  ;;  %v51_v9 = vld [vmem:[%s5232_s2 + $0x110] sm:$0xff] }
  0xe3   :  { %2978 = vmatprep.subr.mxu0 %v4373_v23  ;;  %3008 = vmatprep.subr.mxu1 %v1465_v8  ;;  %v67_v8 = vld [vmem:[%s5232_s2 + $0x190] sm:$0xff]  ;;  %v4481_v15 = vand.u32 4294901760, %v257_v13  ;;  %v1479_v23 = vand.u32 4294901760, %v1478_v44  ;;  %v1486_v44 = vand.u32 4294901760, %v1485_v50 }
  0xe4   :  { %5458 = vst [vmem:[#allocation19_spill] sm:$0xff] %v4460_v32  ;;  %v254_v62 = vsel %vm99_vm0, %v67_v8, 0  ;;  %v5465_v8 = vand.u32 4294901760, %v4449_v11 }
  0xe5   :  { %5462 = vst [vmem:[#allocation23_spill] sm:$0xff] %v4481_v15  ;;  %v4508_v61 = vsub.f32 %v257_v13, %v4481_v15  ;;  %v5469_v13 = vand.u32 4294901760, %v4466_v38 }
  0xe6   :  { %2979 = vmatpush3.xpose.msra.mxu0 %v4393_v58  ;;  %3009 = vmatpush3.xpose.msra.mxu1 %v1353_v55  ;;  %v209_v55 = vsel %vm99_vm0, %v52_v35, 0  ;;  %v1367_v35 = vand.u32 4294901760, %v1366_v46  ;;  %v1373_v58 = vsub.f32 %v4449_v11, %v5465_v8  ;;  %v251_v46 = vsel %vm99_vm0, %v66_v59, 0  ;;  %v50_v8 = vld [vmem:[%s5232_s2 + $0x108] sm:$0xff] }
  0xe7   :  { %2980 = vmatprep.subr.mxu0 %v4399_v7  ;;  %3010 = vmatprep.subr.mxu1 %v1472_v10  ;;  %v4505_v7 = vand.u32 4294901760, %v209_v55  ;;  %5467 = vst [vmem:[#allocation22_spill] sm:$0xff] %v4508_v61  ;;  %v5468_v10 = vand.u32 4294901760, %v4460_v32 }
  0xe8   :  { %v1374_v59 = vand.u32 4294901760, %v1373_v58 }
  0xe9   :  { %5466 = vst [vmem:[#allocation26_spill] sm:$0xff] %v4505_v7  ;;  %v1492_v54 = vsub.f32 %v4460_v32, %v5468_v10  ;;  %v4533_v32 = vsub.f32 %v209_v55, %v4505_v7  ;;  %v4539_v10 = vand.u32 4294901760, %v251_v46  ;;  %v49_v55 = vld [vmem:[%s5232_s2 + $0x100] sm:$0xff] }
  0xea   :  { %2981 = vmatpush3.xpose.msra.mxu0 %v4423_v37  ;;  %3011 = vmatpush3.xpose.msra.mxu1 %v1360_v34  ;;  %v4514_v37 = vand.u32 4294901760, %v254_v62  ;;  %v206_v34 = vsel %vm99_vm0, %v51_v9, 0  ;;  %v65_v9 = vld [vmem:[%s5232_s2 + $0x180] sm:$0xff] }
  0xeb   :  { %2982 = vmatprep.subr.mxu0 %v4428_v0  ;;  %3012 = vmatprep.subr.mxu1 %v1479_v23  ;;  %v1380_v0 = vsub.f32 %v4466_v38, %v5469_v13  ;;  %v5470_v23 = vand.u32 4294901760, %v4474_v17  ;;  %v4535_v11 = vand.u32 4294901760, %v206_v34  ;;  %v248_v58 = vsel %vm99_vm0, %v65_v9, 0 }
  0xec   :  { %v4543_v38 = vsub.f32 %v254_v62, %v4514_v37  ;;  %v5472_v13 = vand.u32 4294901760, %v4494_v56  ;;  %v5473_v62 = vand.u32 4294901760, %v4508_v61 }
  0xed   :  { %v1499_v50 = vsub.f32 %v4474_v17, %v5470_v23  ;;  %5471 = vst [vmem:[#allocation24_spill] sm:$0xff] %v4535_v11  ;;  %v1493_v23 = vand.u32 4294901760, %v1492_v54  ;;  %v203_v17 = vsel %vm99_vm0, %v50_v8, 0  ;;  %v4554_v54 = vsub.f32 %v206_v34, %v4535_v11 }
  0xee   :  { %2983 = vmatpush3.xpose.msra.mxu0 %v4443_v2  ;;  %3013 = vmatpush3.xpose.msra.mxu1 %v1367_v35  ;;  %v1381_v35 = vand.u32 4294901760, %v1380_v0  ;;  %v1506_v8 = vsub.f32 %v4508_v61, %v5473_v62  ;;  %v4559_v9 = vand.u32 4294901760, %v203_v17  ;;  %v4563_v0 = vand.u32 4294901760, %v248_v58 }
  0xef   :  { %2984 = vmatprep.subr.mxu0 %v4445_v5  ;;  %3014 = vmatprep.subr.mxu1 %v1486_v44  ;;  %v1500_v2 = vand.u32 4294901760, %v1499_v50  ;;  %v1387_v44 = vsub.f32 %v4494_v56, %v5472_v13  ;;  %v5345_v5 = vand.u32 4294901760, %v4533_v32  ;;  %v4568_v34 = vsub.f32 %v251_v46, %v4539_v10 }
  0xf0   :  { %v4572_v62 = vsub.f32 %v203_v17, %v4559_v9  ;;  %v5348_v50 = vand.u32 4294901760, %v4554_v54  ;;  %v1507_v46 = vand.u32 4294901760, %v1506_v8  ;;  %v4586_v17 = vsub.f32 %v248_v58, %v4563_v0 }
  0xf1   :  { %5474 = vst [vmem:[#allocation27_spill] sm:$0xff] %v4568_v34  ;;  %v1388_v13 = vand.u32 4294901760, %v1387_v44 }
  0xf2   :  { %2985 = vmatpush3.xpose.msra.mxu0 %v4468_v41  ;;  %3015 = vmatpush3.xpose.msra.mxu1 %v1374_v59  ;;  %v200_v59 = vsel %vm99_vm0, %v49_v55, 0  ;;  %v5475_v55 = vand.u32 4294901760, %v4543_v38  ;;  %5476 = vst [vmem:[#allocation28_spill] sm:$0xff] %v4586_v17  ;;  %v5352_v8 = vand.u32 4294901760, %v4572_v62 }
  0xf3   :  { %2986 = vmatprep.subr.mxu0 %v4481_v15  ;;  %3016 = vmatprep.subr.mxu1 %v1493_v23  ;;  %v1394_v23 = vsub.f32 %v4533_v32, %v5345_v5  ;;  %v4577_v15 = vand.u32 4294901760, %v200_v59 }
  0xf4   :  { %v1513_v44 = vsub.f32 %v4543_v38, %v5475_v55 }
  0xf5   :  { %v1395_v5 = vand.u32 4294901760, %v1394_v23  ;;  %v1408_v23 = vsub.f32 %v4572_v62, %v5352_v8  ;;  %v5487_v8 = vld [vmem:[#allocation20_spill] sm:$0xff] }
  0xf6   :  { %2987 = vmatpush3.xpose.msra.mxu0 %v4505_v7  ;;  %3017 = vmatpush3.xpose.msra.mxu1 %v1381_v35  ;;  %v5349_v35 = vand.u32 4294901760, %v4568_v34  ;;  %v4590_v7 = vsub.f32 %v200_v59, %v4577_v15  ;;  %v1514_v55 = vand.u32 4294901760, %v1513_v44 }
  0xf7   :  { %2988 = vmatprep.subr.mxu0 %v4514_v37  ;;  %3018 = vmatprep.subr.mxu1 %v1500_v2  ;;  %v1401_v2 = vsub.f32 %v4554_v54, %v5348_v50 }
  0xf8   :  { %5477 = vst [vmem:[#allocation29_spill] sm:$0xff] %v4590_v7  ;;  %v1520_v58 = vsub.f32 %v4568_v34, %v5349_v35  ;;  %v5350_v50 = vand.u32 4294901760, %v4590_v7  ;;  %v1409_v35 = vand.u32 4294901760, %v1408_v23 }
  0xf9   :  { %v1402_v59 = vand.u32 4294901760, %v1401_v2 }
  0xfa   :  { %2989 = vmatpush3.xpose.msra.mxu0 %v4535_v11  ;;  %3019 = vmatpush3.xpose.msra.mxu1 %v1388_v13  ;;  %v5351_v13 = vand.u32 4294901760, %v4586_v17 }
  0xfb   :  { %2990 = vmatprep.subr.mxu0 %v4539_v10  ;;  %3020 = vmatprep.subr.mxu1 %v1507_v46  ;;  %v1521_v46 = vand.u32 4294901760, %v1520_v58 }
  0xfc   :  { %v1527_v44 = vsub.f32 %v4586_v17, %v5351_v13  ;;  %v5486_v13 = vld [vmem:[#allocation7_spill] sm:$0xff] }
  0xfe   :  { %2991 = vmatpush3.xpose.msra.mxu0 %v4559_v9  ;;  %3021 = vmatpush3.xpose.msra.mxu1 %v1395_v5  ;;  %v1415_v5 = vsub.f32 %v4590_v7, %v5350_v50  ;;  %v1528_v2 = vand.u32 4294901760, %v1527_v44  ;;  %v5485_v50 = vld [vmem:[#allocation21_spill] sm:$0xff] }
  0xff   :  { %2992 = vmatprep.subr.mxu0 %v4563_v0  ;;  %3022 = vmatprep.subr.mxu1 %v1514_v55 }
 0x100   :  { %v1416_v58 = vand.u32 4294901760, %v1415_v5 }
 0x102   :  { %2993 = vmatpush3.xpose.msra.mxu0 %v4577_v15  ;;  %3023 = vmatpush3.xpose.msra.mxu1 %v1402_v59  ;;  %v4621_v59 = vstv %s5231_s1 }
 0x103   :  { %3024 = vmatprep.subr.mxu1 %v1521_v46  ;;  %3030 = vmatprep.subr.mxu0 %v4172_v42  ;;  %5478 = vst [vmem:[#allocation30_spill] sm:$0xff] %v4621_v59 }
 0x105   :  { %2995 = vmatmul.mubr.f32.vlgmr.msra.gmra.mxu0 %v5446_v25  ;;  %v446_v55 = vpop.f32.mrf.mxu0  ;;  %v5489_v25 = vld [vmem:[#allocation8_spill] sm:$0xff] }
 0x106   :  { %3025 = vmatpush3.xpose.msra.mxu1 %v1409_v35  ;;  %3031 = vmatpush3.xpose.msra.mxu0 %v4182_v19  ;;  %v447_v46 = vadd.f32 %v446_v55, %v4621_v59 }
 0x107   :  { %3026 = vmatprep.subr.mxu1 %v1528_v2  ;;  %3032 = vmatprep.subr.mxu0 %v4197_v6  ;;  %v448_v23 = vpop.f32.mrf.mxu0 }
 0x108   :  { %3062 = vmatprep.mubr.f32.mxu0 %v3918_v4  ;;  %v449_v35 = vadd.f32 %v448_v23, %v4621_v59  ;;  %v5480_v23 = vld [vmem:[#allocation13_spill] sm:$0xff]  ;;  %v5488_v59 = vld [vmem:[#allocation16_spill] sm:$0xff] }
 0x10a   :  { %3027 = vmatpush3.xpose.msra.mxu1 %v1416_v58  ;;  %3033 = vmatpush3.xpose.msra.mxu0 %v4207_v24  ;;  %v5479_v58 = vld [vmem:[#allocation10_spill] sm:$0xff] }
 0x10b   :  { %3034 = vmatprep.subr.mxu0 %v4224_v20  ;;  %3064 = vmatprep.subr.mxu1 %v4150_v51 }
 0x10d   :  { %v678_v44 = vpop.f32.mrf.mxu1  ;;  %3029 = vmatmul.mubr.f32.vlgmr.msra.gmra.mxu1 %v3897_v31 }
 0x10e   :  { %v679_v5 = vadd.f32 %v678_v44, %v447_v46  ;;  %3035 = vmatpush3.xpose.msra.mxu0 %v4239_v40  ;;  %3065 = vmatpush3.xpose.msra.mxu1 %v4163_v39  ;;  %v5481_v46 = vld [vmem:[#allocation14_spill] sm:$0xff]  ;;  %v5483_v44 = vld [vmem:[#allocation19_spill] sm:$0xff] }
 0x10f   :  { %v680_v2 = vpop.f32.mrf.mxu1  ;;  %3036 = vmatprep.subr.mxu0 %v4260_v16  ;;  %3066 = vmatprep.subr.mxu1 %v4168_v49 }
 0x110   :  { %v681_v55 = vadd.f32 %v680_v2, %v449_v35  ;;  %3096 = vmatprep.mubr.f32.mxu1 %v3927_v18  ;;  %v5482_v35 = vld [vmem:[#allocation6_spill] sm:$0xff]  ;;  %v5484_v2 = vld [vmem:[#allocation15_spill] sm:$0xff] }
 0x112   :  { %3037 = vmatpush3.xpose.msra.mxu0 %v4267_v27  ;;  %3067 = vmatpush3.xpose.msra.mxu1 %v4184_v47 }
 0x113   :  { %3038 = vmatprep.subr.mxu0 %v4289_v14  ;;  %3068 = vmatprep.subr.mxu1 %v4192_v48 }
 0x116   :  { %3039 = vmatpush3.xpose.msra.mxu0 %v4307_v28  ;;  %3069 = vmatpush3.xpose.msra.mxu1 %v4209_v26 }
 0x117   :  { %3040 = vmatprep.subr.mxu0 %v4312_v21  ;;  %3070 = vmatprep.subr.mxu1 %v4228_v30 }
 0x11a   :  { %3041 = vmatpush3.xpose.msra.mxu0 %v4326_v22  ;;  %3071 = vmatpush3.xpose.msra.mxu1 %v4241_v43 }
 0x11b   :  { %3042 = vmatprep.subr.mxu0 %v4347_v52  ;;  %3072 = vmatprep.subr.mxu1 %v4255_v3 }
 0x11e   :  { %3043 = vmatpush3.xpose.msra.mxu0 %v4354_v36  ;;  %3073 = vmatpush3.xpose.msra.mxu1 %v4278_v57 }
 0x11f   :  { %3044 = vmatprep.subr.mxu0 %v4363_v63  ;;  %3074 = vmatprep.subr.mxu1 %v4280_v1 }
 0x122   :  { %3045 = vmatpush3.xpose.msra.mxu0 %v4382_v33  ;;  %3075 = vmatpush3.xpose.msra.mxu1 %v4302_v45 }
 0x123   :  { %3046 = vmatprep.subr.mxu0 %v4403_v60  ;;  %3076 = vmatprep.subr.mxu1 %v4318_v53 }
 0x126   :  { %3047 = vmatpush3.xpose.msra.mxu0 %v4421_v29  ;;  %3077 = vmatpush3.xpose.msra.mxu1 %v4328_v12 }
 0x127   :  { %3048 = vmatprep.subr.mxu0 %v5479_v58  ;;  %3078 = vmatprep.subr.mxu1 %v5480_v23 }
 0x12a   :  { %3049 = vmatpush3.xpose.msra.mxu0 %v5481_v46  ;;  %3079 = vmatpush3.xpose.msra.mxu1 %v5482_v35  ;;  %v5490_v46 = vld [vmem:[#allocation9_spill] sm:$0xff] }
 0x12b   :  { %3050 = vmatprep.subr.mxu0 %v5483_v44  ;;  %3080 = vmatprep.subr.mxu1 %v5484_v2  ;;  %v5491_v44 = vld [vmem:[#allocation11_spill] sm:$0xff] }
 0x12e   :  { %3051 = vmatpush3.xpose.msra.mxu0 %v5485_v50  ;;  %3081 = vmatpush3.xpose.msra.mxu1 %v5486_v13  ;;  %v5492_v50 = vld [vmem:[#allocation12_spill] sm:$0xff] }
 0x12f   :  { %3052 = vmatprep.subr.mxu0 %v5487_v8  ;;  %3082 = vmatprep.subr.mxu1 %v5488_v59 }
 0x132   :  { %3053 = vmatpush3.xpose.msra.mxu0 %v4494_v56  ;;  %3083 = vmatpush3.xpose.msra.mxu1 %v5489_v25  ;;  %v5493_v56 = vld [vmem:[#allocation23_spill] sm:$0xff] }
 0x133   :  { %3054 = vmatprep.subr.mxu0 %v4508_v61  ;;  %3084 = vmatprep.subr.mxu1 %v5490_v46  ;;  %v5494_v61 = vld [vmem:[#allocation26_spill] sm:$0xff] }
 0x136   :  { %3055 = vmatpush3.xpose.msra.mxu0 %v4533_v32  ;;  %3085 = vmatpush3.xpose.msra.mxu1 %v5491_v44 }
 0x137   :  { %3056 = vmatprep.subr.mxu0 %v4543_v38  ;;  %3086 = vmatprep.subr.mxu1 %v5492_v50 }
 0x13a   :  { %3057 = vmatpush3.xpose.msra.mxu0 %v4554_v54  ;;  %3087 = vmatpush3.xpose.msra.mxu1 %v4468_v41  ;;  %v5495_v41 = vand.u32 4294901760, %v4172_v42  ;;  %v5498_v42 = vand.u32 4294901760, %v4207_v24 }
 0x13b   :  { %3058 = vmatprep.subr.mxu0 %v4568_v34  ;;  %3088 = vmatprep.subr.mxu1 %v5493_v56 }
 0x13e   :  { %3059 = vmatpush3.xpose.msra.mxu0 %v4572_v62  ;;  %3089 = vmatpush3.xpose.msra.mxu1 %v5494_v61  ;;  %v5496_v61 = vand.u32 4294901760, %v4182_v19 }
 0x13f   :  { %3060 = vmatprep.subr.mxu0 %v4586_v17  ;;  %3090 = vmatprep.subr.mxu1 %v4514_v37 }
 0x142   :  { %3061 = vmatpush3.xpose.msra.mxu0 %v4590_v7  ;;  %3091 = vmatpush3.xpose.msra.mxu1 %v4535_v11  ;;  %v5497_v7 = vand.u32 4294901760, %v4197_v6  ;;  %v5500_v6 = vand.u32 4294901760, %v4239_v40  ;;  %v5511_v40 = vand.u32 4294901760, %v4403_v60  ;;  %v5521_v60 = vld [vmem:[#allocation17_spill] sm:$0xff] }
 0x143   :  { %3092 = vmatprep.subr.mxu1 %v4539_v10  ;;  %3098 = vmatprep.subr.mxu0 %v5495_v41  ;;  %v5499_v41 = vand.u32 4294901760, %v4224_v20  ;;  %v5503_v20 = vand.u32 4294901760, %v4289_v14  ;;  %v5518_v14 = vld [vmem:[#allocation21_spill] sm:$0xff] }
 0x145   :  { %v815_v34 = vpop.f32.mrf.mxu0  ;;  %3063 = vmatmul.mubr.f32.vlgmr.msra.gmra.mxu0 %v3918_v4 }
 0x146   :  { %v816_v56 = vadd.f32 %v815_v34, %v679_v5  ;;  %3093 = vmatpush3.xpose.msra.mxu1 %v4559_v9  ;;  %3099 = vmatpush3.xpose.msra.mxu0 %v5496_v61  ;;  %v5501_v34 = vand.u32 4294901760, %v4260_v16  ;;  %v5514_v16 = vld [vmem:[#allocation14_spill] sm:$0xff] }
 0x147   :  { %v817_v17 = vpop.f32.mrf.mxu0  ;;  %3094 = vmatprep.subr.mxu1 %v4563_v0  ;;  %3100 = vmatprep.subr.mxu0 %v5497_v7 }
 0x148   :  { %v818_v11 = vadd.f32 %v817_v17, %v681_v55  ;;  %3130 = vmatprep.mubr.f32.mxu0 %v3897_v31  ;;  %v5529_v17 = vld [vmem:[#allocation27_spill] sm:$0xff] }
 0x14a   :  { %3095 = vmatpush3.xpose.msra.mxu1 %v4577_v15  ;;  %3101 = vmatpush3.xpose.msra.mxu0 %v5498_v42  ;;  %v5538_v42 = vld [vmem:[#allocation24_spill] sm:$0xff] }
 0x14b   :  { %3102 = vmatprep.subr.mxu0 %v5499_v41  ;;  %3132 = vmatprep.subr.mxu1 %v4150_v51  ;;  %v5502_v51 = vand.u32 4294901760, %v4267_v27  ;;  %v5515_v27 = vand.u32 4294901760, %v5514_v16 }
 0x14d   :  { %v921_v19 = vpop.f32.mrf.mxu1  ;;  %3097 = vmatmul.mubr.f32.vlgmr.msra.gmra.mxu1 %v3927_v18 }
 0x14e   :  { %v4703_v61 = vadd.f32 %v921_v19, %v816_v56  ;;  %3103 = vmatpush3.xpose.msra.mxu0 %v5500_v6  ;;  %3133 = vmatpush3.xpose.msra.mxu1 %v4163_v39  ;;  %v5504_v39 = vand.u32 4294901760, %v4307_v28  ;;  %v5522_v28 = vand.u32 4294901760, %v5521_v60  ;;  %v92_v6 = vld [vmem:[%s5232_s2 + $0x258] sm:$0xff] }
 0x14f   :  { %v923_v7 = vpop.f32.mrf.mxu1  ;;  %3104 = vmatprep.subr.mxu0 %v5501_v34  ;;  %3134 = vmatprep.subr.mxu1 %v4168_v49  ;;  %v5505_v49 = vand.u32 4294901760, %v4312_v21  ;;  %v5523_v21 = vld [vmem:[#allocation22_spill] sm:$0xff] }
 0x150   :  { %v4711_v24 = vadd.f32 %v923_v7, %v818_v11  ;;  %3164 = vmatprep.mubr.f32.mxu1 %v3897_v31  ;;  %v5506_v11 = vand.u32 4294901760, %v4326_v22  ;;  %v96_v22 = vld [vmem:[%s5232_s2 + $0x278] sm:$0xff] }
 0x152   :  { %3105 = vmatpush3.xpose.msra.mxu0 %v5502_v51  ;;  %3135 = vmatpush3.xpose.msra.mxu1 %v4184_v47  ;;  %v5507_v47 = vand.u32 4294901760, %v4347_v52  ;;  %v5526_v52 = vand.u32 4294901760, %v4543_v38  ;;  %v5530_v38 = vand.u32 4294901760, %v5529_v17 }
 0x153   :  { %3106 = vmatprep.subr.mxu0 %v5503_v20  ;;  %3136 = vmatprep.subr.mxu1 %v4192_v48  ;;  %v5508_v48 = vand.u32 4294901760, %v4354_v36  ;;  %v95_v36 = vld [vmem:[%s5232_s2 + $0x270] sm:$0xff] }
 0x154   :  { %v338_v56 = vsel %vm99_vm0, %v95_v36, 0  ;;  %v88_v36 = vld [vmem:[%s5232_s2 + $0x238] sm:$0xff] }
 0x156   :  { %3107 = vmatpush3.xpose.msra.mxu0 %v5504_v39  ;;  %3137 = vmatpush3.xpose.msra.mxu1 %v4209_v26  ;;  %v5509_v26 = vand.u32 4294901760, %v4363_v63  ;;  %v5527_v63 = vand.u32 4294901760, %v4554_v54  ;;  %v5532_v54 = vand.u32 4294901760, %v4572_v62 }
 0x157   :  { %3108 = vmatprep.subr.mxu0 %v5505_v49  ;;  %3138 = vmatprep.subr.mxu1 %v4228_v30  ;;  %v5510_v30 = vand.u32 4294901760, %v4382_v33  ;;  %v5528_v33 = vld [vmem:[#allocation18_spill] sm:$0xff] }
 0x15a   :  { %3109 = vmatpush3.xpose.msra.mxu0 %v5506_v11  ;;  %3139 = vmatpush3.xpose.msra.mxu1 %v4241_v43  ;;  %v5512_v43 = vand.u32 4294901760, %v4421_v29  ;;  %v5519_v29 = vand.u32 4294901760, %v5518_v14  ;;  %v329_v11 = vsel %vm99_vm0, %v92_v6, 0 }
 0x15b   :  { %3110 = vmatprep.subr.mxu0 %v5507_v47  ;;  %3140 = vmatprep.subr.mxu1 %v4255_v3  ;;  %v5513_v3 = vand.u32 4294901760, %v5479_v58  ;;  %v5534_v58 = vld [vmem:[#allocation28_spill] sm:$0xff] }
 0x15e   :  { %3111 = vmatpush3.xpose.msra.mxu0 %v5508_v48  ;;  %3141 = vmatpush3.xpose.msra.mxu1 %v4278_v57  ;;  %v5516_v57 = vld [vmem:[#allocation19_spill] sm:$0xff] }
 0x15f   :  { %3112 = vmatprep.subr.mxu0 %v5509_v26  ;;  %3142 = vmatprep.subr.mxu1 %v4280_v1  ;;  %v5517_v1 = vand.u32 4294901760, %v5516_v57  ;;  %v4854_v26 = vand.u32 4294901760, %v329_v11 }
 0x161   :  { %v4871_v57 = vsub.f32 %v329_v11, %v4854_v26 }
 0x162   :  { %3113 = vmatpush3.xpose.msra.mxu0 %v5510_v30  ;;  %3143 = vmatpush3.xpose.msra.mxu1 %v4302_v45  ;;  %v5520_v45 = vand.u32 4294901760, %v5487_v8  ;;  %v5531_v8 = vld [vmem:[#allocation23_spill] sm:$0xff] }
 0x163   :  { %3114 = vmatprep.subr.mxu0 %v5511_v40  ;;  %3144 = vmatprep.subr.mxu1 %v4318_v53  ;;  %v5524_v53 = vand.u32 4294901760, %v5523_v21  ;;  %v90_v40 = vld [vmem:[%s5232_s2 + $0x248] sm:$0xff] }
 0x164   :  { %v323_v14 = vsel %vm99_vm0, %v90_v40, 0 }
 0x166   :  { %3115 = vmatpush3.xpose.msra.mxu0 %v5512_v43  ;;  %3145 = vmatpush3.xpose.msra.mxu1 %v4328_v12  ;;  %v5525_v12 = vand.u32 4294901760, %v4533_v32 }
 0x167   :  { %3116 = vmatprep.subr.mxu0 %v5513_v3  ;;  %3146 = vmatprep.subr.mxu1 %v5480_v23  ;;  %v5535_v23 = vand.u32 4294901760, %v5534_v58 }
 0x16a   :  { %3117 = vmatpush3.xpose.msra.mxu0 %v5515_v27  ;;  %3147 = vmatpush3.xpose.msra.mxu1 %v5482_v35 }
 0x16b   :  { %3118 = vmatprep.subr.mxu0 %v5517_v1  ;;  %3148 = vmatprep.subr.mxu1 %v5484_v2 }
 0x16e   :  { %3119 = vmatpush3.xpose.msra.mxu0 %v5519_v29  ;;  %3149 = vmatpush3.xpose.msra.mxu1 %v5486_v13  ;;  %v4793_v13 = vand.u32 4294901760, %v338_v56 }
 0x16f   :  { %3120 = vmatprep.subr.mxu0 %v5520_v45  ;;  %3150 = vmatprep.subr.mxu1 %v5488_v59  ;;  %v5533_v59 = vld [vmem:[#allocation26_spill] sm:$0xff] }
 0x170   :  { %v4809_v35 = vsub.f32 %v338_v56, %v4793_v13  ;;  %v89_v45 = vld [vmem:[%s5232_s2 + $0x240] sm:$0xff] }
 0x172   :  { %3121 = vmatpush3.xpose.msra.mxu0 %v5522_v28  ;;  %3151 = vmatpush3.xpose.msra.mxu1 %v5489_v25  ;;  %v341_v25 = vsel %vm99_vm0, %v96_v22, 0  ;;  %v2154_v20 = vand.u32 4294901760, %v4809_v35 }
 0x173   :  { %3122 = vmatprep.subr.mxu0 %v5524_v53  ;;  %3152 = vmatprep.subr.mxu1 %v5490_v46  ;;  %v4784_v32 = vand.u32 4294901760, %v341_v25  ;;  %v93_v46 = vld [vmem:[%s5232_s2 + $0x260] sm:$0xff]  ;;  %v4888_v53 = vand.u32 4294901760, %v323_v14 }
 0x174   :  { %v332_v19 = vsel %vm99_vm0, %v93_v46, 0 }
 0x175   :  { %v4799_v5 = vsub.f32 %v341_v25, %v4784_v32  ;;  %v4827_v51 = vand.u32 4294901760, %v332_v19  ;;  %v320_v25 = vsel %vm99_vm0, %v89_v45, 0  ;;  %v83_v45 = vld [vmem:[%s5232_s2 + $0x210] sm:$0xff] }
 0x176   :  { %3123 = vmatpush3.xpose.msra.mxu0 %v5525_v12  ;;  %3153 = vmatpush3.xpose.msra.mxu1 %v5491_v44  ;;  %v5536_v44 = vld [vmem:[#allocation29_spill] sm:$0xff] }
 0x177   :  { %3124 = vmatprep.subr.mxu0 %v5526_v52  ;;  %3154 = vmatprep.subr.mxu1 %v5492_v50  ;;  %v94_v50 = vld [vmem:[%s5232_s2 + $0x268] sm:$0xff]  ;;  %v5537_v2 = vand.u32 4294901760, %v5536_v44  ;;  %v2147_v41 = vand.u32 4294901760, %v4799_v5  ;;  %v2175_v52 = vand.u32 4294901760, %v4871_v57 }
 0x178   :  { %v335_v55 = vsel %vm99_vm0, %v94_v50, 0  ;;  %v87_v50 = vld [vmem:[%s5232_s2 + $0x230] sm:$0xff]  ;;  %v86_v44 = vld [vmem:[%s5232_s2 + $0x228] sm:$0xff] }
 0x179   :  { %v4811_v62 = vand.u32 4294901760, %v335_v55  ;;  %v2176_v17 = vsub.f32 %v4871_v57, %v2175_v52  ;;  %v314_v46 = vsel %vm99_vm0, %v87_v50, 0 }
 0x17a   :  { %3125 = vmatpush3.xpose.msra.mxu0 %v5527_v63  ;;  %3155 = vmatpush3.xpose.msra.mxu1 %v5528_v33  ;;  %v4904_v63 = vsub.f32 %v323_v14, %v4888_v53  ;;  %v4906_v33 = vand.u32 4294901760, %v320_v25 }
 0x17b   :  { %3126 = vmatprep.subr.mxu0 %v5530_v38  ;;  %3156 = vmatprep.subr.mxu1 %v5531_v8  ;;  %v4825_v34 = vsub.f32 %v335_v55, %v4811_v62  ;;  %v317_v8 = vsel %vm99_vm0, %v88_v36, 0  ;;  %v2177_v55 = vand.u32 4294901760, %v2176_v17  ;;  %v302_v17 = vsel %vm99_vm0, %v83_v45, 0 }
 0x17d   :  { %v2161_v48 = vand.u32 4294901760, %v4825_v34 }
 0x17e   :  { %3127 = vmatpush3.xpose.msra.mxu0 %v5532_v54  ;;  %3157 = vmatpush3.xpose.msra.mxu1 %v5533_v59  ;;  %v4920_v54 = vsub.f32 %v320_v25, %v4906_v33  ;;  %v2189_v59 = vand.u32 4294901760, %v4904_v63 }
 0x17f   :  { %3128 = vmatprep.subr.mxu0 %v5535_v23  ;;  %3158 = vmatprep.subr.mxu1 %v4514_v37  ;;  %v3504_v37 = vmov 0.0   ;;  %v4927_v23 = vand.u32 4294901760, %v317_v8 }
 0x181   :  { %v4941_v6 = vsub.f32 %v317_v8, %v4927_v23  ;;  %v82_v8 = vld [vmem:[%s5232_s2 + $0x208] sm:$0xff] }
 0x182   :  { %3129 = vmatpush3.xpose.msra.mxu0 %v5537_v2  ;;  %3159 = vmatpush3.xpose.msra.mxu1 %v5538_v42  ;;  %v2190_v2 = vsub.f32 %v4904_v63, %v2189_v59  ;;  %v2196_v42 = vand.u32 4294901760, %v4920_v54 }
 0x183   :  { %3160 = vmatprep.subr.mxu1 %v4539_v10  ;;  %3268 = vmatprep.subr.mxu0 %v3504_v37  ;;  %v2148_v10 = vsub.f32 %v4799_v5, %v2147_v41 }
 0x184   :  { %v2197_v11 = vsub.f32 %v4920_v54, %v2196_v42 }
 0x185   :  { %v1089_v7 = vpop.f32.mrf.mxu0  ;;  %3131 = vmatmul.mubr.f32.vlgmr.msra.gmra.mxu0 %v3897_v31 }
 0x186   :  { %v1090_v39 = vadd.f32 %v1089_v7, %v4703_v61  ;;  %3161 = vmatpush3.xpose.msra.mxu1 %v4559_v9  ;;  %3269 = vmatpush3.xpose.msra.mxu0 %v4784_v32  ;;  %v91_v61 = vld [vmem:[%s5232_s2 + $0x250] sm:$0xff]  ;;  %v4846_v9 = vsub.f32 %v332_v19, %v4827_v51  ;;  %v4943_v7 = vand.u32 4294901760, %v314_v46 }
 0x187   :  { %v1091_v49 = vpop.f32.mrf.mxu0  ;;  %3162 = vmatprep.subr.mxu1 %v4563_v0  ;;  %3270 = vmatprep.subr.mxu0 %v3504_v37  ;;  %v2155_v0 = vsub.f32 %v4809_v35, %v2154_v20  ;;  %v326_v30 = vsel %vm99_vm0, %v91_v61, 0 }
 0x188   :  { %v1092_v47 = vadd.f32 %v1091_v49, %v4711_v24  ;;  %3300 = vmatprep.mubr.msk.f32.mxu0 %vm3505_vm1, %v3504_v37  ;;  %v2149_v24 = vand.u32 4294901760, %v2148_v10  ;;  %v2168_v16 = vand.u32 4294901760, %v4846_v9  ;;  %v4873_v1 = vand.u32 4294901760, %v326_v30  ;;  %v85_v10 = vld [vmem:[%s5232_s2 + $0x220] sm:$0xff] }
 0x189   :  { %v2156_v3 = vand.u32 4294901760, %v2155_v0  ;;  %v2191_v49 = vand.u32 4294901760, %v2190_v2  ;;  %v2203_v0 = vand.u32 4294901760, %v4941_v6  ;;  %v299_v2 = vsel %vm99_vm0, %v82_v8, 0 }
 0x18a   :  { %3163 = vmatpush3.xpose.msra.mxu1 %v4577_v15  ;;  %3271 = vmatpush3.xpose.msra.mxu0 %v4793_v13  ;;  %v2162_v15 = vsub.f32 %v4825_v34, %v2161_v48  ;;  %v2169_v21 = vsub.f32 %v4846_v9, %v2168_v16  ;;  %v4894_v12 = vsub.f32 %v326_v30, %v4873_v1  ;;  %v84_v30 = vld [vmem:[%s5232_s2 + $0x218] sm:$0xff] }
 0x18b   :  { %3272 = vmatprep.subr.mxu0 %v3504_v37  ;;  %3303 = vmatprep.subr.mxu1 %v3504_v37 }
 0x18c   :  { %v2163_v28 = vand.u32 4294901760, %v2162_v15  ;;  %v2170_v56 = vand.u32 4294901760, %v2169_v21  ;;  %v2182_v38 = vand.u32 4294901760, %v4894_v12  ;;  %v2204_v15 = vsub.f32 %v4941_v6, %v2203_v0 }
 0x18d   :  { %v1193_v43 = vpop.f32.mrf.mxu1  ;;  %3165 = vmatmul.mubr.f32.vlgmr.msra.gmra.mxu1 %v3897_v31 }
 0x18e   :  { %v4867_v27 = vadd.f32 %v1193_v43, %v1090_v39  ;;  %3273 = vmatpush3.xpose.msra.mxu0 %v4811_v62  ;;  %3304 = vmatpush3.xpose.msra.mxu1 %v2149_v24  ;;  %v2183_v58 = vsub.f32 %v4894_v12, %v2182_v38  ;;  %v311_v39 = vsel %vm99_vm0, %v86_v44, 0  ;;  %v308_v24 = vsel %vm99_vm0, %v85_v10, 0 }
 0x18f   :  { %v1195_v29 = vpop.f32.mrf.mxu1  ;;  %3274 = vmatprep.subr.mxu0 %v3504_v37  ;;  %3305 = vmatprep.subr.mxu1 %v3504_v37  ;;  %v4958_v61 = vand.u32 4294901760, %v311_v39  ;;  %v4967_v40 = vand.u32 4294901760, %v308_v24  ;;  %v2198_v43 = vand.u32 4294901760, %v2197_v11  ;;  %v2205_v21 = vand.u32 4294901760, %v2204_v15 }
 0x190   :  { %v4881_v60 = vadd.f32 %v1195_v29, %v1092_v47  ;;  %3335 = vmatprep.mubr.msk.f32.mxu1 %vm3505_vm1, %v3504_v37  ;;  %v2184_v19 = vand.u32 4294901760, %v2183_v58  ;;  %v4956_v47 = vsub.f32 %v314_v46, %v4943_v7  ;;  %v305_v29 = vsel %vm99_vm0, %v84_v30, 0 }
 0x191   :  { %v4990_v36 = vand.u32 4294901760, %v305_v29  ;;  %v5007_v44 = vand.u32 4294901760, %v302_v17  ;;  %v5022_v11 = vand.u32 4294901760, %v299_v2 }
 0x192   :  { %v2699_v22 = vcombine.low %v4867_v27, %v4881_v60  ;;  %3275 = vmatpush3.xpose.msra.mxu0 %v4827_v51  ;;  %3306 = vmatpush3.xpose.msra.mxu1 %v2156_v3  ;;  %v4971_v3 = vsub.f32 %v311_v39, %v4958_v61  ;;  %v2210_v14 = vand.u32 4294901760, %v4956_v47 }
 0x193   :  { %3276 = vmatprep.subr.mxu0 %v3504_v37  ;;  %3307 = vmatprep.subr.mxu1 %v3504_v37  ;;  %v5002_v58 = vsub.f32 %v305_v29, %v4990_v36  ;;  %v5030_v15 = vsub.f32 %v299_v2, %v5022_v11 }
 0x194   :  { %v2211_v25 = vsub.f32 %v4956_v47, %v2210_v14 }
 0x196   :  { %3277 = vmatpush3.xpose.msra.mxu0 %v4854_v26  ;;  %3308 = vmatpush3.xpose.msra.mxu1 %v2163_v28  ;;  %v4984_v28 = vsub.f32 %v308_v24, %v4967_v40  ;;  %v2231_v24 = vand.u32 4294901760, %v5002_v58 }
 0x197   :  { %3278 = vmatprep.subr.mxu0 %v3504_v37  ;;  %3309 = vmatprep.subr.mxu1 %v3504_v37 }
 0x198   :  { %v2224_v50 = vand.u32 4294901760, %v4984_v28  ;;  %v2232_v29 = vsub.f32 %v5002_v58, %v2231_v24 }
 0x19a   :  { %3279 = vmatpush3.xpose.msra.mxu0 %v4873_v1  ;;  %3310 = vmatpush3.xpose.msra.mxu1 %v2170_v56  ;;  %v2217_v56 = vand.u32 4294901760, %v4971_v3  ;;  %v2225_v39 = vsub.f32 %v4984_v28, %v2224_v50 }
 0x19b   :  { %3280 = vmatprep.subr.mxu0 %v3504_v37  ;;  %3311 = vmatprep.subr.mxu1 %v3504_v37 }
 0x19c   :  { %v2218_v46 = vsub.f32 %v4971_v3, %v2217_v56 }
 0x19e   :  { %3281 = vmatpush3.xpose.msra.mxu0 %v4888_v53  ;;  %3312 = vmatpush3.xpose.msra.mxu1 %v2177_v55  ;;  %v2212_v55 = vand.u32 4294901760, %v2211_v25  ;;  %v2219_v10 = vand.u32 4294901760, %v2218_v46  ;;  %v2233_v25 = vand.u32 4294901760, %v2232_v29 }
 0x19f   :  { %3282 = vmatprep.subr.mxu0 %v3504_v37  ;;  %3313 = vmatprep.subr.mxu1 %v3504_v37 }
 0x1a2   :  { %3283 = vmatpush3.xpose.msra.mxu0 %v4906_v33  ;;  %3314 = vmatpush3.xpose.msra.mxu1 %v2184_v19  ;;  %v81_v19 = vld [vmem:[%s5232_s2 + $0x200] sm:$0xff]  ;;  %s3507_s2 = smov [#allocation3]  }
 0x1a3   :  { %3284 = vmatprep.subr.mxu0 %v3504_v37  ;;  %3315 = vmatprep.subr.mxu1 %v3504_v37  ;;  %v296_v30 = vsel %vm99_vm0, %v81_v19, 0  ;;  %s2750_s8 = sshll.u32 %s3507_s2, 4  ;;  %s2751_s8 = int_to_ptr.vmem [resolvable:$true] %s2750_s8 }
 0x1a4   :  { %v5035_v45 = vand.u32 4294901760, %v296_v30  ;;  %s3482_s9 = scalar_lea.vmem %s2751_s8, 80  ;;  %s3486_s10 = scalar_lea.vmem %s2751_s8, 96 }
 0x1a5   :  { %p3483_p0 = scmp.ne.s32.totalorder %s2751_s8, %s3482_s9  ;;  %p3487_p1 = scmp.lt.s32.totalorder %s2751_s8, %s2751_s8 }
 0x1a6   :  { %3285 = vmatpush3.xpose.msra.mxu0 %v4927_v23  ;;  %3316 = vmatpush3.xpose.msra.mxu1 %v2191_v49  ;;  %v5020_v49 = vsub.f32 %v302_v17, %v5007_v44  ;;  %v5042_v17 = vsub.f32 %v296_v30, %v5035_v45  ;;  %v5539_v30 = vld [vmem:[#allocation25_spill] sm:$0xff]  ;;  %p3488_p2 = scmp.lt.s32.totalorder %s3486_s10, %s3482_s9 }
 0x1a7   :  { %3286 = vmatprep.subr.mxu0 %v3504_v37  ;;  %3317 = vmatprep.subr.mxu1 %v3504_v37 }
 0x1a8   :  { %v2252_v19 = vand.u32 4294901760, %v5042_v17  ;;  %p3489_p3 = por %p3488_p2, %p3487_p1 }
 0x1aa   :  { %3287 = vmatpush3.xpose.msra.mxu0 %v4943_v7  ;;  %3318 = vmatpush3.xpose.msra.mxu1 %v2198_v43  ;;  %v2226_v43 = vand.u32 4294901760, %v2225_v39  ;;  %p3490_p4 = pnand %p3489_p3, %p3483_p0 }
 0x1ab   :  { %3288 = vmatprep.subr.mxu0 %v3504_v37  ;;  %3319 = vmatprep.subr.mxu1 %v3504_v37 }
 0x1ae   :  { %3289 = vmatpush3.xpose.msra.mxu0 %v4958_v61  ;;  %3320 = vmatpush3.xpose.msra.mxu1 %v2205_v21  ;;  %v2238_v21 = vand.u32 4294901760, %v5020_v49 }
 0x1af   :  { %3290 = vmatprep.subr.mxu0 %v3504_v37  ;;  %3321 = vmatprep.subr.mxu1 %v3504_v37 }
 0x1b0   :  { %v2239_v8 = vsub.f32 %v5020_v49, %v2238_v21 }
 0x1b2   :  { %3291 = vmatpush3.xpose.msra.mxu0 %v4967_v40  ;;  %3322 = vmatpush3.xpose.msra.mxu1 %v2212_v55  ;;  %v2245_v55 = vand.u32 4294901760, %v5030_v15  ;;  %v2240_v46 = vand.u32 4294901760, %v2239_v8  ;;  %v5540_v8 = vld [vmem:[#allocation30_spill] sm:$0xff] }
 0x1b3   :  { %3292 = vmatprep.subr.mxu0 %v3504_v37  ;;  %3323 = vmatprep.subr.mxu1 %v3504_v37 }
 0x1b4   :  { %v2246_v2 = vsub.f32 %v5030_v15, %v2245_v55 }
 0x1b6   :  { %3293 = vmatpush3.xpose.msra.mxu0 %v4990_v36  ;;  %3324 = vmatpush3.xpose.msra.mxu1 %v2219_v10  ;;  %v2247_v39 = vand.u32 4294901760, %v2246_v2  ;;  %v2253_v10 = vsub.f32 %v5042_v17, %v2252_v19 }
 0x1b7   :  { %3294 = vmatprep.subr.mxu0 %v3504_v37  ;;  %3325 = vmatprep.subr.mxu1 %v3504_v37 }
 0x1b8   :  { %v2254_v29 = vand.u32 4294901760, %v2253_v10 }
 0x1ba   :  { %3295 = vmatpush3.xpose.msra.mxu0 %v5007_v44  ;;  %3326 = vmatpush3.xpose.msra.mxu1 %v2226_v43 }
 0x1bb   :  { %3296 = vmatprep.subr.mxu0 %v3504_v37  ;;  %3327 = vmatprep.subr.mxu1 %v3504_v37 }
 0x1be   :  { %3297 = vmatpush3.xpose.msra.mxu0 %v5022_v11  ;;  %3328 = vmatpush3.xpose.msra.mxu1 %v2233_v25 }
 0x1bf   :  { %3298 = vmatprep.subr.mxu0 %v3504_v37  ;;  %3329 = vmatprep.subr.mxu1 %v3504_v37 }
 0x1c2   :  { %3299 = vmatpush3.xpose.msra.mxu0 %v5035_v45  ;;  %3330 = vmatpush3.xpose.msra.mxu1 %v2240_v46 }
 0x1c3   :  { %3331 = vmatprep.subr.mxu1 %v3504_v37  ;;  %3338 = vmatprep.subr.mxu0 %v3504_v37 }
 0x1c5   :  { %3301 = vmatmul.mubr.f32.vlgmr.msra.gmra.mxu0 %v5539_v30  ;;  %v1301_v43 = vpop.f32.mrf.mxu0 }
 0x1c6   :  { %3332 = vmatpush3.xpose.msra.mxu1 %v2247_v39  ;;  %3339 = vmatpush3.xpose.msra.mxu0 %v4799_v5  ;;  %v1302_v46 = vadd.f32 %v1301_v43, %v5540_v8 }
 0x1c7   :  { %3333 = vmatprep.subr.mxu1 %v3504_v37  ;;  %3340 = vmatprep.subr.mxu0 %v3504_v37  ;;  %v1303_v25 = vpop.f32.mrf.mxu0 }
 0x1c8   :  { %3370 = vmatprep.mubr.msk.f32.mxu0 %vm3505_vm1, %v3504_v37  ;;  %v1304_v2 = vadd.f32 %v1303_v25, %v5540_v8 }
 0x1ca   :  { %3334 = vmatpush3.xpose.msra.mxu1 %v2254_v29  ;;  %3341 = vmatpush3.xpose.msra.mxu0 %v4809_v35 }
 0x1cb   :  { %3342 = vmatprep.subr.mxu0 %v3504_v37  ;;  %3373 = vmatprep.subr.mxu1 %v3504_v37 }
 0x1cd   :  { %v1533_v39 = vpop.f32.mrf.mxu1  ;;  %3336 = vmatmul.mubr.f32.vlgmr.msra.gmra.mxu1 %v3897_v31 }
 0x1ce   :  { %v1534_v10 = vadd.f32 %v1533_v39, %v1302_v46  ;;  %3343 = vmatpush3.xpose.msra.mxu0 %v4825_v34  ;;  %3374 = vmatpush3.xpose.msra.mxu1 %v4784_v32 }
 0x1cf   :  { %v1535_v30 = vpop.f32.mrf.mxu1  ;;  %3344 = vmatprep.subr.mxu0 %v3504_v37  ;;  %3375 = vmatprep.subr.mxu1 %v3504_v37 }
 0x1d0   :  { %v1536_v43 = vadd.f32 %v1535_v30, %v1304_v2  ;;  %3405 = vmatprep.mubr.msk.f32.mxu1 %vm3505_vm1, %v3504_v37 }
 0x1d2   :  { %3345 = vmatpush3.xpose.msra.mxu0 %v4846_v9  ;;  %3376 = vmatpush3.xpose.msra.mxu1 %v4793_v13 }
 0x1d3   :  { %3346 = vmatprep.subr.mxu0 %v3504_v37  ;;  %3377 = vmatprep.subr.mxu1 %v3504_v37 }
 0x1d6   :  { %3347 = vmatpush3.xpose.msra.mxu0 %v4871_v57  ;;  %3378 = vmatpush3.xpose.msra.mxu1 %v4811_v62 }
 0x1d7   :  { %3348 = vmatprep.subr.mxu0 %v3504_v37  ;;  %3379 = vmatprep.subr.mxu1 %v3504_v37 }
 0x1da   :  { %3349 = vmatpush3.xpose.msra.mxu0 %v4894_v12  ;;  %3380 = vmatpush3.xpose.msra.mxu1 %v4827_v51 }
 0x1db   :  { %3350 = vmatprep.subr.mxu0 %v3504_v37  ;;  %3381 = vmatprep.subr.mxu1 %v3504_v37 }
 0x1de   :  { %3351 = vmatpush3.xpose.msra.mxu0 %v4904_v63  ;;  %3382 = vmatpush3.xpose.msra.mxu1 %v4854_v26 }
 0x1df   :  { %3352 = vmatprep.subr.mxu0 %v3504_v37  ;;  %3383 = vmatprep.subr.mxu1 %v3504_v37 }
 0x1e2   :  { %3353 = vmatpush3.xpose.msra.mxu0 %v4920_v54  ;;  %3384 = vmatpush3.xpose.msra.mxu1 %v4873_v1 }
 0x1e3   :  { %3354 = vmatprep.subr.mxu0 %v3504_v37  ;;  %3385 = vmatprep.subr.mxu1 %v3504_v37 }
 0x1e6   :  { %3355 = vmatpush3.xpose.msra.mxu0 %v4941_v6  ;;  %3386 = vmatpush3.xpose.msra.mxu1 %v4888_v53 }
 0x1e7   :  { %3356 = vmatprep.subr.mxu0 %v3504_v37  ;;  %3387 = vmatprep.subr.mxu1 %v3504_v37 }
 0x1ea   :  { %3357 = vmatpush3.xpose.msra.mxu0 %v4956_v47  ;;  %3388 = vmatpush3.xpose.msra.mxu1 %v4906_v33 }
 0x1eb   :  { %3358 = vmatprep.subr.mxu0 %v3504_v37  ;;  %3389 = vmatprep.subr.mxu1 %v3504_v37 }
 0x1ee   :  { %3359 = vmatpush3.xpose.msra.mxu0 %v4971_v3  ;;  %3390 = vmatpush3.xpose.msra.mxu1 %v4927_v23 }
 0x1ef   :  { %3360 = vmatprep.subr.mxu0 %v3504_v37  ;;  %3391 = vmatprep.subr.mxu1 %v3504_v37 }
 0x1f2   :  { %3361 = vmatpush3.xpose.msra.mxu0 %v4984_v28  ;;  %3392 = vmatpush3.xpose.msra.mxu1 %v4943_v7 }
 0x1f3   :  { %3362 = vmatprep.subr.mxu0 %v3504_v37  ;;  %3393 = vmatprep.subr.mxu1 %v3504_v37 }
 0x1f6   :  { %3363 = vmatpush3.xpose.msra.mxu0 %v5002_v58  ;;  %3394 = vmatpush3.xpose.msra.mxu1 %v4958_v61 }
 0x1f7   :  { %3364 = vmatprep.subr.mxu0 %v3504_v37  ;;  %3395 = vmatprep.subr.mxu1 %v3504_v37 }
 0x1fa   :  { %3365 = vmatpush3.xpose.msra.mxu0 %v5020_v49  ;;  %3396 = vmatpush3.xpose.msra.mxu1 %v4967_v40 }
 0x1fb   :  { %3366 = vmatprep.subr.mxu0 %v3504_v37  ;;  %3397 = vmatprep.subr.mxu1 %v3504_v37 }
 0x1fe   :  { %3367 = vmatpush3.xpose.msra.mxu0 %v5030_v15  ;;  %3398 = vmatpush3.xpose.msra.mxu1 %v4990_v36 }
 0x1ff   :  { %3368 = vmatprep.subr.mxu0 %v3504_v37  ;;  %3399 = vmatprep.subr.mxu1 %v3504_v37 }
 0x202   :  { %3369 = vmatpush3.xpose.msra.mxu0 %v5042_v17  ;;  %3400 = vmatpush3.xpose.msra.mxu1 %v5007_v44 }
 0x203   :  { %3401 = vmatprep.subr.mxu1 %v3504_v37  ;;  %3408 = vmatprep.subr.mxu0 %v3504_v37 }
 0x205   :  { %v1670_v29 = vpop.f32.mrf.mxu0  ;;  %3371 = vmatmul.mubr.f32.vlgmr.msra.gmra.mxu0 %v3918_v4 }
 0x206   :  { %v1671_v25 = vadd.f32 %v1670_v29, %v1534_v10  ;;  %3402 = vmatpush3.xpose.msra.mxu1 %v5022_v11  ;;  %3409 = vmatpush3.xpose.msra.mxu0 %v2147_v41 }
 0x207   :  { %v1672_v46 = vpop.f32.mrf.mxu0  ;;  %3403 = vmatprep.subr.mxu1 %v3504_v37  ;;  %3410 = vmatprep.subr.mxu0 %v3504_v37 }
 0x208   :  { %v1673_v2 = vadd.f32 %v1672_v46, %v1536_v43  ;;  %3440 = vmatprep.mubr.msk.f32.mxu0 %vm3505_vm1, %v3504_v37 }
 0x20a   :  { %3404 = vmatpush3.xpose.msra.mxu1 %v5035_v45  ;;  %3411 = vmatpush3.xpose.msra.mxu0 %v2154_v20 }
 0x20b   :  { %3412 = vmatprep.subr.mxu0 %v3504_v37  ;;  %3443 = vmatprep.subr.mxu1 %v3504_v37 }
 0x20d   :  { %v1776_v4 = vpop.f32.mrf.mxu1  ;;  %3406 = vmatmul.mubr.f32.vlgmr.msra.gmra.mxu1 %v3927_v18 }
 0x20e   :  { %v1777_v5 = vadd.f32 %v1776_v4, %v1671_v25  ;;  %3413 = vmatpush3.xpose.msra.mxu0 %v2161_v48  ;;  %3444 = vmatpush3.xpose.msra.mxu1 %v4784_v32 }
 0x20f   :  { %v1778_v41 = vpop.f32.mrf.mxu1  ;;  %3414 = vmatprep.subr.mxu0 %v3504_v37  ;;  %3445 = vmatprep.subr.mxu1 %v3504_v37 }
 0x210   :  { %v1779_v35 = vadd.f32 %v1778_v41, %v1673_v2  ;;  %3475 = vmatprep.mubr.msk.f32.mxu1 %vm3505_vm1, %v3504_v37 }
 0x212   :  { %3415 = vmatpush3.xpose.msra.mxu0 %v2168_v16  ;;  %3446 = vmatpush3.xpose.msra.mxu1 %v4793_v13 }
 0x213   :  { %3416 = vmatprep.subr.mxu0 %v3504_v37  ;;  %3447 = vmatprep.subr.mxu1 %v3504_v37 }
 0x216   :  { %3417 = vmatpush3.xpose.msra.mxu0 %v2175_v52  ;;  %3448 = vmatpush3.xpose.msra.mxu1 %v4811_v62  ;;  %v3506_v62 = vmov 1966171168  }
 0x217   :  { %3418 = vmatprep.subr.mxu0 %v3504_v37  ;;  %3449 = vmatprep.subr.mxu1 %v3504_v37  ;;  %v2702_v34 = vunpack.c.l.s4 %v3506_v62 }
 0x219   :  { %v2703_v9 = vunpack.c.0.s8 %v2702_v34 }
 0x21a   :  { %3419 = vmatpush3.xpose.msra.mxu0 %v2182_v38  ;;  %3450 = vmatpush3.xpose.msra.mxu1 %v4827_v51  ;;  %v2704_v51 = vlaneseq }
 0x21b   :  { %3420 = vmatprep.subr.mxu0 %v3504_v37  ;;  %3451 = vmatprep.subr.mxu1 %v3504_v37 }
 0x21c   :  { %v2705_v48 = vshrl.u32 %v2704_v51, 7  ;;  %vm2741_vm2 = vcmp.lt.s32.totalorder %v2704_v51, 640 }
 0x21e   :  { %3421 = vmatpush3.xpose.msra.mxu0 %v2189_v59  ;;  %3452 = vmatpush3.xpose.msra.mxu1 %v4854_v26 }
 0x21f   :  { %3422 = vmatprep.subr.mxu0 %v3504_v37  ;;  %3453 = vmatprep.subr.mxu1 %v3504_v37 }
 0x222   :  { %3423 = vmatpush3.xpose.msra.mxu0 %v2196_v42  ;;  %3454 = vmatpush3.xpose.msra.mxu1 %v4873_v1  ;;  %v2706_v1 = vsub.s32 %v2703_v9, %v2705_v48 }
 0x223   :  { %3424 = vmatprep.subr.mxu0 %v3504_v37  ;;  %3455 = vmatprep.subr.mxu1 %v3504_v37 }
 0x226   :  { %3425 = vmatpush3.xpose.msra.mxu0 %v2203_v0  ;;  %3456 = vmatpush3.xpose.msra.mxu1 %v4888_v53 }
 0x227   :  { %3426 = vmatprep.subr.mxu0 %v3504_v37  ;;  %3457 = vmatprep.subr.mxu1 %v3504_v37 }
 0x22a   :  { %3427 = vmatpush3.xpose.msra.mxu0 %v2210_v14  ;;  %3458 = vmatpush3.xpose.msra.mxu1 %v4906_v33 }
 0x22b   :  { %3428 = vmatprep.subr.mxu0 %v3504_v37  ;;  %3459 = vmatprep.subr.mxu1 %v3504_v37 }
 0x22e   :  { %3429 = vmatpush3.xpose.msra.mxu0 %v2217_v56  ;;  %3460 = vmatpush3.xpose.msra.mxu1 %v4927_v23 }
 0x22f   :  { %3430 = vmatprep.subr.mxu0 %v3504_v37  ;;  %3461 = vmatprep.subr.mxu1 %v3504_v37 }
 0x232   :  { %3431 = vmatpush3.xpose.msra.mxu0 %v2224_v50  ;;  %3462 = vmatpush3.xpose.msra.mxu1 %v4943_v7 }
 0x233   :  { %3432 = vmatprep.subr.mxu0 %v3504_v37  ;;  %3463 = vmatprep.subr.mxu1 %v3504_v37 }
 0x236   :  { %3433 = vmatpush3.xpose.msra.mxu0 %v2231_v24  ;;  %3464 = vmatpush3.xpose.msra.mxu1 %v4958_v61 }
 0x237   :  { %3434 = vmatprep.subr.mxu0 %v3504_v37  ;;  %3465 = vmatprep.subr.mxu1 %v3504_v37 }
 0x23a   :  { %3435 = vmatpush3.xpose.msra.mxu0 %v2238_v21  ;;  %3466 = vmatpush3.xpose.msra.mxu1 %v4967_v40 }
 0x23b   :  { %3436 = vmatprep.subr.mxu0 %v3504_v37  ;;  %3467 = vmatprep.subr.mxu1 %v3504_v37 }
 0x23e   :  { %3437 = vmatpush3.xpose.msra.mxu0 %v2245_v55  ;;  %3468 = vmatpush3.xpose.msra.mxu1 %v4990_v36 }
 0x23f   :  { %3438 = vmatprep.subr.mxu0 %v3504_v37  ;;  %3469 = vmatprep.subr.mxu1 %v3504_v37 }
 0x242   :  { %3439 = vmatpush3.xpose.msra.mxu0 %v2252_v19  ;;  %3470 = vmatpush3.xpose.msra.mxu1 %v5007_v44 }
 0x243   :  { %3471 = vmatprep.subr.mxu1 %v3504_v37 }
 0x245   :  { %v1944_v18 = vpop.f32.mrf.mxu0  ;;  %3441 = vmatmul.mubr.f32.vlgmr.msra.gmra.mxu0 %v3897_v31 }
 0x246   :  { %v1945_v32 = vadd.f32 %v1944_v18, %v1777_v5  ;;  %3472 = vmatpush3.xpose.msra.mxu1 %v5022_v11 }
 0x247   :  { %v1946_v13 = vpop.f32.mrf.mxu0  ;;  %3473 = vmatprep.subr.mxu1 %v3504_v37  ;;  %v2707_v37 = vrot.slane %v2699_v22, %v2706_v1 }
 0x248   :  { %v1947_v20 = vadd.f32 %v1946_v13, %v1779_v35 }
 0x24a   :  { %3474 = vmatpush3.xpose.msra.mxu1 %v5035_v45 }
 0x24d   :  { %v2048_v26 = vpop.f32.mrf.mxu1  ;;  %3476 = vmatmul.mubr.f32.vlgmr.msra.gmra.mxu1 %v3897_v31 }
 0x24e   :  { %v2049_v16 = vadd.f32 %v2048_v26, %v1945_v32 }
 0x24f   :  { %v2050_v57 = vpop.f32.mrf.mxu1 }
 0x250   :  { %v2051_v53 = vadd.f32 %v2050_v57, %v1947_v20 }
 0x252   :  { %v2700_v12 = vcombine.low %v2049_v16, %v2051_v53 }
 0x254   :  { %v2714_v52 = vrot.slane %v2700_v12, %v2706_v1 }
 0x256   :  { %v2722_v63 = vcombine.low %v2707_v37, %v2714_v52 }
 0x258   :  { %v2729_v56 = vrot.slane %v2722_v63, %v2706_v1 }
 0x285   :  { %v2140_v33 = vpop.f32.mrf.mxu0 }
 0x286   :  { %v2141_v54 = vadd.f32 %v2140_v33, %v5540_v8 }
 0x287   :  { %v3302_v38 = vpop.f32.mrf.mxu0 }
 0x28d   :  { %v2291_v59 = vpop.f32.mrf.mxu1 }
 0x28e   :  { %v2292_v23 = vadd.f32 %v2291_v59, %v2141_v54 }
 0x28f   :  { %v3337_v42 = vpop.f32.mrf.mxu1 }
 0x2c5   :  { %v2395_v6 = vpop.f32.mrf.mxu0 }
 0x2c6   :  { %v2396_v31 = vadd.f32 %v2395_v6, %v2292_v23 }
 0x2c7   :  { %v3372_v7 = vpop.f32.mrf.mxu0 }
 0x2cd   :  { %v2484_v47 = vpop.f32.mrf.mxu1 }
 0x2ce   :  { %v2485_v3 = vadd.f32 %v2484_v47, %v2396_v31 }
 0x2cf   :  { %v3407_v61 = vpop.f32.mrf.mxu1 }
 0x305   :  { %v2603_v0 = vpop.f32.mrf.mxu0 }
 0x306   :  { %v2604_v14 = vadd.f32 %v2603_v0, %v2485_v3 }
 0x307   :  { %v3442_v40 = vpop.f32.mrf.mxu0 }
 0x30d   :  { %v2690_v27 = vpop.f32.mrf.mxu1 }
 0x30e   :  { %v2691_v60 = vadd.f32 %v2690_v27, %v2604_v14 }
 0x30f   :  { %v3477_v22 = vpop.f32.mrf.mxu1 }
 0x310   :  { %v2721_v28 = vrot.slane %v2691_v60, %v2706_v1 }
 0x312   :  { %v2736_v36 = vrot.slane %v2721_v28, %v2706_v1 }
 0x314   :  { %v2737_v50 = vcombine.low %v2729_v56, %v2736_v36 }
 0x316   :  { %2743 = vst.msk [vmem:[#allocation3] sm:$0x1f] %vm2741_vm2, %v2737_v50 }
 0x317   :  { %3493 = shalt.err (!%p3490_p4)
}
 0x318   :  { %2753 = dma.vmem_to_hbm [thread:$0]  %s2751_s8, 80, %s5233_s3, [#allocation4]  }
 0x319   :  { %3502 = dma.done.wait [#allocation4], 80  }
 0x31a   :  { %3503 = vsyncadd [#allocation4], 4294967216 }
 0x31b   :  { %2757 = vsyncpa [#allocation4], 1 }

</bundles_post_ra>
